<compile_context>
chip_gen: v5e
topology: v5e:2x2
jax: 0.10.0
libtpu: 0.0.40
codegen_flags: <defaults>
</compile_context>

<pallas_src>
import functools

import jax
import jax.numpy as jnp
from jax import lax
from jax.experimental import pallas as pl
from jax.experimental.pallas import tpu as pltpu


# ----------------------------------------------------------------------------
# Fused kernel: affine -> matmul -> masked softmax entropy -> analytic grads.
# Grid axis 0 iterates over the 3 stacked model passes:
#   group 0: model(x)          (drives the loss / gradients)
#   group 1: model(tta(x))     (computed, unused by the loss -- faithful to spec)
#   group 2: model_anchor(x)   (computed, unused by the loss -- faithful to spec)
# Outputs:
#   out : (3B, KP) padded logits; column `num_classes` carries the per-row entropy
#   dg  : (1, D)   dLoss/d(gamma_flat)   (written only on group 0)
#   db  : (1, D)   dLoss/d(beta_flat)    (written only on group 0)
# ----------------------------------------------------------------------------
def _fused_kernel(xs_ref, sc_ref, sh_ref, w_ref, b_ref,
                  out_ref, dg_ref, db_ref, *, num_classes, coef):
    x = xs_ref[...]                                       # (B, D)
    y = x * sc_ref[...] + sh_ref[...]                     # (B, D) * (1, D) + (1, D)
    z = jnp.dot(y, w_ref[...], preferred_element_type=jnp.float32) + b_ref[...]

    # Numerically stable softmax / entropy over the first `num_classes` lanes only.
    col = lax.broadcasted_iota(jnp.int32, z.shape, 1)     # (B, KP)
    valid = col < num_classes
    zm = jnp.where(valid, z, jnp.float32(-1e30))
    m = jnp.max(zm, axis=1, keepdims=True)
    e = jnp.where(valid, jnp.exp(zm - m), 0.0)
    s = jnp.sum(e, axis=1, keepdims=True)
    p = e / s
    logp = jnp.where(valid, zm - m - jnp.log(s), 0.0)
    ent = -jnp.sum(p * logp, axis=1, keepdims=True)       # (B, 1)

    # Lane-dense packed output: logits in cols [0, K), entropy in col K,
    # zeros (== padded logits) elsewhere.  One unmasked (8,128) store.
    out_ref[...] = jnp.where(col == num_classes, ent, z)

    # Analytic backward for the group that drives the loss (group 0).
    #   dL/dz = -(c/B) * p * (logp + H)   (zero on padded lanes since p == 0)
    #   dL/dy = dL/dz @ W^T ; dgamma_flat = sum_b x*dY ; dbeta_flat = sum_b dY
    @pl.when(pl.program_id(0) == 0)
    def _():
        gz = (-coef) * (p * (logp + ent))                 # (B, KP)
        dy = lax.dot_general(gz, w_ref[...],
                             (((1,), (1,)), ((), ())),    # contract over class dim
                             preferred_element_type=jnp.float32)  # (B, D)
        dg_ref[...] = jnp.sum(x * dy, axis=0, keepdims=True)
        db_ref[...] = jnp.sum(dy, axis=0, keepdims=True)


def fused_forward_entropy_grads(xs, scales, shifts, W_pad, b_pad, *,
                                batch, num_classes, coef):
    three_b, D = xs.shape
    KP = W_pad.shape[1]
    kern = functools.partial(_fused_kernel, num_classes=num_classes, coef=coef)
    out, dg, db = pl.pallas_call(
        kern,
        out_shape=(jax.ShapeDtypeStruct((three_b, KP), jnp.float32),
                   jax.ShapeDtypeStruct((1, D), jnp.float32),
                   jax.ShapeDtypeStruct((1, D), jnp.float32)),
        grid=(3,),
        in_specs=[
            pl.BlockSpec((batch, D), lambda i: (i, 0)),        # stacked activations
            pl.BlockSpec((None, 1, D), lambda i: (i, 0, 0)),   # per-group scale
            pl.BlockSpec((None, 1, D), lambda i: (i, 0, 0)),   # per-group shift
            pl.BlockSpec((D, KP), lambda i: (0, 0)),           # W: resident, DMA'd once
            pl.BlockSpec((1, KP), lambda i: (0, 0)),           # b: resident
        ],
        out_specs=(
            pl.BlockSpec((batch, KP), lambda i: (i, 0)),
            pl.BlockSpec((1, D), lambda i: (0, 0)),            # written on group 0 only
            pl.BlockSpec((1, D), lambda i: (0, 0)),
        ),
        compiler_params=pltpu.CompilerParams(
            dimension_semantics=("arbitrary",)),
    )(xs, scales, shifts, W_pad, b_pad)
    return out, dg[0], db[0]


# ----------------------------------------------------------------------------
# param_robustness (FIM-weighted interpolation toward theta_0) + SGD step.
# Plain JAX: it touches only 2*C scalars.
# ----------------------------------------------------------------------------
def param_robustness_and_sgd(theta_0, p_cur, grads, fim_0, *, mu, lr,
                             clip=1e-4, eps=1e-8, first_step):
    fim_t = jnp.minimum(grads * grads, clip)
    if first_step:                      # torch: if self.index == 0: FIM_0 = FIM_t
        fim_0 = fim_t
    a = (1.0 - mu) * theta_0 * (fim_0 + eps) + mu * p_cur * (fim_t + eps)
    den = (1.0 - mu) * (fim_0 + eps) + mu * (fim_t + eps)
    p_interp = a / den
    # TODO(synk): real optimizer state (momentum/Adam) untranslatable; plain SGD step.
    p_new = p_interp - lr * grads
    return p_new, fim_0


# ----------------------------------------------------------------------------
# OURS forward_and_adapt (single adaptation step)
# ----------------------------------------------------------------------------
def ours_forward(x, params, anchor_flat, theta0_params, W_pad, b_pad, *,
                 num_classes, mu, lambda1, lambda2, lr, fim_0, first_step):
    B, C, H, Wsp = x.shape
    hw = H * Wsp
    D = C * hw
    gamma, beta = params
    a_gamma_flat, a_beta_flat = anchor_flat          # hoisted: anchor never changes

    x_flat = x.reshape(B, D).astype(jnp.float32)
    # TODO(synk): get_tta_transforms replaced with a deterministic horizontal flip.
    x_aug_flat = x[..., ::-1].reshape(B, D).astype(jnp.float32)

    gamma_flat = jnp.repeat(gamma, hw)               # changes once per step
    beta_flat = jnp.repeat(beta, hw)

    # Stack the three model passes into one kernel call (W fetched once).
    xs = jnp.concatenate([x_flat, x_aug_flat, x_flat], axis=0)       # (3B, D)
    scales = jnp.stack([gamma_flat, gamma_flat, a_gamma_flat])[:, None, :]
    shifts = jnp.stack([beta_flat, beta_flat, a_beta_flat])[:, None, :]

    c_total = 1.0 + lambda1 + lambda2
    out, dg_flat, db_flat = fused_forward_entropy_grads(
        xs, scales, shifts, W_pad, b_pad,
        batch=B, num_classes=num_classes, coef=c_total / B)

    logits = out[:B, :num_classes]                   # model(x) logits (returned)
    ent = out[:B, num_classes]                       # fused softmax_entropy(logits)
    # consistency(x, y) ignores y => loss_1 == loss_2 == loss_0.
    loss = c_total * ent.mean()

    # VJP of the channel-wise repeat: per-channel segment sum of flat grads.
    g_gamma = dg_flat.reshape(C, hw).sum(axis=1)
    g_beta = db_flat.reshape(C, hw).sum(axis=1)
    grads = jnp.concatenate([g_gamma, g_beta])

    theta_0 = jnp.concatenate(theta0_params)
    p_cur = jnp.concatenate([gamma, beta])
    p_new, fim_0 = param_robustness_and_sgd(
        theta_0, p_cur, grads, fim_0, mu=mu, lr=lr, first_step=first_step)

    new_gamma, new_beta = p_new[:C], p_new[C:]
    return logits, (new_gamma, new_beta), fim_0, loss


# ----------------------------------------------------------------------------
if __name__ == "__main__":
    key = jax.random.PRNGKey(0)
    B, C, H, Wsp, K = 8, 4, 16, 16, 10
    hw = H * Wsp
    D = C * hw
    KP = 128                                         # padded class dim (lane-dense)

    k1, k2, k3 = jax.random.split(key, 3)
    x = jax.random.normal(k1, (B, C, H, Wsp), dtype=jnp.float32)
    W_cls = 0.05 * jax.random.normal(k2, (D, K), dtype=jnp.float32)
    b_cls = 0.05 * jax.random.normal(k3, (K,), dtype=jnp.float32)

    # Pad the classifier once, outside the adaptation loop.
    W_pad = jnp.zeros((D, KP), jnp.float32).at[:, :K].set(W_cls)
    b_pad = jnp.zeros((1, KP), jnp.float32).at[0, :K].set(b_cls)

    gamma0 = jnp.ones((C,), jnp.float32)
    beta0 = jnp.zeros((C,), jnp.float32)
    gamma, beta = gamma0, beta0

    # Anchor-model (frozen copy of init) affine, flattened once and hoisted.
    a_gamma_flat = jnp.repeat(gamma0, hw)
    a_beta_flat = jnp.repeat(beta0, hw)

    mu, lambda1, lambda2, lr = 0.2, 1.0, 1.0, 1e-3
    steps = 1                                        # cfg.OPTIM.STEPS
    fim_0 = jnp.zeros((2 * C,), jnp.float32)

    outputs, loss = None, None
    for idx in range(steps):
        outputs, (gamma, beta), fim_0, loss = ours_forward(
            x, (gamma, beta), (a_gamma_flat, a_beta_flat), (gamma0, beta0),
            W_pad, b_pad, num_classes=K, mu=mu, lambda1=lambda1,
            lambda2=lambda2, lr=lr, fim_0=fim_0, first_step=(idx == 0))

    jax.block_until_ready(outputs)
    jax.block_until_ready((gamma, beta, fim_0, loss))
    print("KERNEL_OK")
</pallas_src>

<mosaic_0001>
module attributes {stable_mosaic.version = 11 : i64} {
  func.func @_fused_kernel(%arg0: i32, %arg1: memref<8x1024xf32, #tpu.memory_space<vmem>>, %arg2: memref<1x1x1024xf32, #tpu.memory_space<vmem>>, %arg3: memref<1x1x1024xf32, #tpu.memory_space<vmem>>, %arg4: memref<1024x128xf32, #tpu.memory_space<vmem>>, %arg5: memref<1x128xf32, #tpu.memory_space<vmem>>, %arg6: memref<8x128xf32, #tpu.memory_space<vmem>>, %arg7: memref<1x1024xf32, #tpu.memory_space<vmem>>, %arg8: memref<1x1024xf32, #tpu.memory_space<vmem>>) attributes {dimension_semantics = [#tpu.dimension_semantics<arbitrary>], iteration_bounds = array<i64: 3>, scalar_prefetch = 0 : i64, scratch_operands = 0 : i64, tpu.core_type = #tpu.core_type<tc>, window_params = [{transform_indices = @transform_0, window_bounds = array<i64: 8, 1024>}, {transform_indices = @transform_1, window_bounds = array<i64: 1, 1, 1024>}, {transform_indices = @transform_2, window_bounds = array<i64: 1, 1, 1024>}, {pipeline_mode = #tpu.pipeline_mode<synchronous>, transform_indices = @transform_3, window_bounds = array<i64: 1024, 128>}, {pipeline_mode = #tpu.pipeline_mode<synchronous>, transform_indices = @transform_4, window_bounds = array<i64: 1, 128>}, {transform_indices = @transform_5, window_bounds = array<i64: 8, 128>}, {pipeline_mode = #tpu.pipeline_mode<synchronous>, transform_indices = @transform_6, window_bounds = array<i64: 1, 1024>}, {pipeline_mode = #tpu.pipeline_mode<synchronous>, transform_indices = @transform_7, window_bounds = array<i64: 1, 1024>}]} {
    %c0 = arith.constant 0 : index
    %c0_0 = arith.constant 0 : index
    %0 = vector.load %arg1[%c0, %c0_0] : memref<8x1024xf32, #tpu.memory_space<vmem>>, vector<8x1024xf32>
    %c0_1 = arith.constant 0 : index
    %c0_2 = arith.constant 0 : index
    %c0_3 = arith.constant 0 : index
    %1 = vector.load %arg2[%c0_1, %c0_2, %c0_3] : memref<1x1x1024xf32, #tpu.memory_space<vmem>>, vector<1x1x1024xf32>
    %2 = vector.shape_cast %1 : vector<1x1x1024xf32> to vector<1x1024xf32>
    %3 = vector.broadcast %2 : vector<1x1024xf32> to vector<8x1024xf32>
    %4 = arith.mulf %0, %3 : vector<8x1024xf32>
    %c0_4 = arith.constant 0 : index
    %c0_5 = arith.constant 0 : index
    %c0_6 = arith.constant 0 : index
    %5 = vector.load %arg3[%c0_4, %c0_5, %c0_6] : memref<1x1x1024xf32, #tpu.memory_space<vmem>>, vector<1x1x1024xf32>
    %6 = vector.shape_cast %5 : vector<1x1x1024xf32> to vector<1x1024xf32>
    %7 = vector.broadcast %6 : vector<1x1024xf32> to vector<8x1024xf32>
    %8 = arith.addf %4, %7 : vector<8x1024xf32>
    %c0_7 = arith.constant 0 : index
    %c0_8 = arith.constant 0 : index
    %9 = vector.load %arg4[%c0_7, %c0_8] : memref<1024x128xf32, #tpu.memory_space<vmem>>, vector<1024x128xf32>
    %cst = arith.constant dense<0.000000e+00> : vector<8x128xf32>
    %10 = tpu.matmul %8, %9, %cst {dimension_numbers = #tpu.dot_dimension_numbers<[1], [0], [0], [1], [0, 0, 1, 1], [], []>} : vector<8x1024xf32>, vector<1024x128xf32>, vector<8x128xf32> -> vector<8x128xf32>
    %c0_9 = arith.constant 0 : index
    %c0_10 = arith.constant 0 : index
    %11 = vector.load %arg5[%c0_9, %c0_10] : memref<1x128xf32, #tpu.memory_space<vmem>>, vector<1x128xf32>
    %12 = vector.broadcast %11 : vector<1x128xf32> to vector<8x128xf32>
    %13 = arith.addf %10, %12 : vector<8x128xf32>
    %14 = tpu.iota {dimensions = array<i32: 1>} : vector<8x128xi32>
    %c10_i32 = arith.constant 10 : i32
    %15 = vector.broadcast %c10_i32 : i32 to vector<8x128xi32>
    %16 = arith.cmpi slt, %14, %15 : vector<8x128xi32>
    %cst_11 = arith.constant -1.000000e+30 : f32
    %17 = vector.broadcast %cst_11 : f32 to vector<8x128xf32>
    %18 = arith.select %16, %13, %17 : vector<8x128xi1>, vector<8x128xf32>
    %cst_12 = arith.constant dense<0xFF800000> : vector<8xf32>
    %19 = vector.multi_reduction <maximumf>, %18, %cst_12 [1] : vector<8x128xf32> to vector<8xf32>
    %20 = vector.shape_cast %19 : vector<8xf32> to vector<8x1xf32>
    %21 = vector.broadcast %20 : vector<8x1xf32> to vector<8x128xf32>
    %22 = arith.subf %18, %21 : vector<8x128xf32>
    %23 = math.exp %22 : vector<8x128xf32>
    %cst_13 = arith.constant 0.000000e+00 : f32
    %24 = vector.broadcast %cst_13 : f32 to vector<8x128xf32>
    %25 = arith.select %16, %23, %24 : vector<8x128xi1>, vector<8x128xf32>
    %cst_14 = arith.constant dense<0.000000e+00> : vector<8xf32>
    %26 = vector.multi_reduction <add>, %25, %cst_14 [1] : vector<8x128xf32> to vector<8xf32>
    %27 = vector.shape_cast %26 : vector<8xf32> to vector<8x1xf32>
    %28 = vector.broadcast %27 : vector<8x1xf32> to vector<8x128xf32>
    %29 = arith.divf %25, %28 : vector<8x128xf32>
    %30 = vector.broadcast %20 : vector<8x1xf32> to vector<8x128xf32>
    %31 = arith.subf %18, %30 : vector<8x128xf32>
    %32 = math.log %27 : vector<8x1xf32>
    %33 = vector.broadcast %32 : vector<8x1xf32> to vector<8x128xf32>
    %34 = arith.subf %31, %33 : vector<8x128xf32>
    %cst_15 = arith.constant 0.000000e+00 : f32
    %35 = vector.broadcast %cst_15 : f32 to vector<8x128xf32>
    %36 = arith.select %16, %34, %35 : vector<8x128xi1>, vector<8x128xf32>
    %37 = arith.mulf %29, %36 : vector<8x128xf32>
    %cst_16 = arith.constant dense<0.000000e+00> : vector<8xf32>
    %38 = vector.multi_reduction <add>, %37, %cst_16 [1] : vector<8x128xf32> to vector<8xf32>
    %39 = vector.shape_cast %38 : vector<8xf32> to vector<8x1xf32>
    %cst_17 = arith.constant 0.000000e+00 : f32
    %40 = vector.broadcast %cst_17 : f32 to vector<8x1xf32>
    %41 = arith.subf %40, %39 : vector<8x1xf32>
    %c10_i32_18 = arith.constant 10 : i32
    %42 = vector.broadcast %c10_i32_18 : i32 to vector<8x128xi32>
    %43 = arith.cmpi eq, %14, %42 : vector<8x128xi32>
    %44 = vector.shape_cast %41 : vector<8x1xf32> to vector<8x1xf32>
    %45 = vector.broadcast %44 : vector<8x1xf32> to vector<8x128xf32>
    %46 = arith.select %43, %45, %13 : vector<8x128xi1>, vector<8x128xf32>
    %c0_19 = arith.constant 0 : index
    %c0_20 = arith.constant 0 : index
    %47 = vector.load %arg6[%c0_19, %c0_20] : memref<8x128xf32, #tpu.memory_space<vmem>>, vector<8x128xf32>
    tpu.vector_store %arg6[%c0_19, %c0_20], %46 {strides = array<i32>} : memref<8x128xf32, #tpu.memory_space<vmem>>, vector<8x128xf32>,
    %c0_i32 = arith.constant 0 : i32
    %48 = arith.cmpi eq, %arg0, %c0_i32 : i32
    %49 = arith.extui %48 : i1 to i32
    %c0_i32_21 = arith.constant 0 : i32
    %50 = arith.cmpi ne, %49, %c0_i32_21 : i32
    scf.if %50 {
      %51 = vector.broadcast %41 : vector<8x1xf32> to vector<8x128xf32>
      %52 = arith.addf %36, %51 : vector<8x128xf32>
      %53 = arith.mulf %29, %52 : vector<8x128xf32>
      %cst_22 = arith.constant -3.750000e-01 : f32
      %54 = vector.broadcast %cst_22 : f32 to vector<8x128xf32>
      %55 = arith.mulf %54, %53 : vector<8x128xf32>
      %c0_23 = arith.constant 0 : index
      %c0_24 = arith.constant 0 : index
      %56 = vector.load %arg4[%c0_23, %c0_24] : memref<1024x128xf32, #tpu.memory_space<vmem>>, vector<1024x128xf32>
      %cst_25 = arith.constant dense<0.000000e+00> : vector<8x1024xf32>
      %57 = tpu.matmul %55, %56, %cst_25 {dimension_numbers = #tpu.dot_dimension_numbers<[1], [1], [0], [0], [0, 0, 1, 0], [], []>} : vector<8x128xf32>, vector<1024x128xf32>, vector<8x1024xf32> -> vector<8x1024xf32>
      %58 = arith.mulf %0, %57 : vector<8x1024xf32>
      %cst_26 = arith.constant dense<0.000000e+00> : vector<1024xf32>
      %59 = vector.multi_reduction <add>, %58, %cst_26 [0] : vector<8x1024xf32> to vector<1024xf32>
      %60 = vector.shape_cast %59 : vector<1024xf32> to vector<1x1024xf32>
      %c0_27 = arith.constant 0 : index
      %c0_28 = arith.constant 0 : index
      %61 = vector.load %arg7[%c0_27, %c0_28] : memref<1x1024xf32, #tpu.memory_space<vmem>>, vector<1x1024xf32>
      tpu.vector_store %arg7[%c0_27, %c0_28], %60 {strides = array<i32>} : memref<1x1024xf32, #tpu.memory_space<vmem>>, vector<1x1024xf32>,
      %cst_29 = arith.constant dense<0.000000e+00> : vector<1024xf32>
      %62 = vector.multi_reduction <add>, %57, %cst_29 [0] : vector<8x1024xf32> to vector<1024xf32>
      %63 = vector.shape_cast %62 : vector<1024xf32> to vector<1x1024xf32>
      %c0_30 = arith.constant 0 : index
      %c0_31 = arith.constant 0 : index
      %64 = vector.load %arg8[%c0_30, %c0_31] : memref<1x1024xf32, #tpu.memory_space<vmem>>, vector<1x1024xf32>
      tpu.vector_store %arg8[%c0_30, %c0_31], %63 {strides = array<i32>} : memref<1x1024xf32, #tpu.memory_space<vmem>>, vector<1x1024xf32>,
    } else {
    }
    return
  }
  func.func @transform_0(%arg0: i32) -> (i32, i32) {
    %c0_i32 = arith.constant 0 : i32
    %c0_i32_0 = arith.constant 0 : i32
    return %arg0, %c0_i32 : i32, i32
  }
  func.func @transform_1(%arg0: i32) -> (i32, i32, i32) {
    %c0_i32 = arith.constant 0 : i32
    %c0_i32_0 = arith.constant 0 : i32
    %c0_i32_1 = arith.constant 0 : i32
    return %arg0, %c0_i32, %c0_i32_0 : i32, i32, i32
  }
  func.func @transform_2(%arg0: i32) -> (i32, i32, i32) {
    %c0_i32 = arith.constant 0 : i32
    %c0_i32_0 = arith.constant 0 : i32
    %c0_i32_1 = arith.constant 0 : i32
    return %arg0, %c0_i32, %c0_i32_0 : i32, i32, i32
  }
  func.func @transform_3(%arg0: i32) -> (i32, i32) {
    %c0_i32 = arith.constant 0 : i32
    %c0_i32_0 = arith.constant 0 : i32
    %c0_i32_1 = arith.constant 0 : i32
    return %c0_i32, %c0_i32_0 : i32, i32
  }
  func.func @transform_4(%arg0: i32) -> (i32, i32) {
    %c0_i32 = arith.constant 0 : i32
    %c0_i32_0 = arith.constant 0 : i32
    %c0_i32_1 = arith.constant 0 : i32
    return %c0_i32, %c0_i32_0 : i32, i32
  }
  func.func @transform_5(%arg0: i32) -> (i32, i32) {
    %c0_i32 = arith.constant 0 : i32
    %c0_i32_0 = arith.constant 0 : i32
    return %arg0, %c0_i32 : i32, i32
  }
  func.func @transform_6(%arg0: i32) -> (i32, i32) {
    %c0_i32 = arith.constant 0 : i32
    %c0_i32_0 = arith.constant 0 : i32
    %c0_i32_1 = arith.constant 0 : i32
    return %c0_i32, %c0_i32_0 : i32, i32
  }
  func.func @transform_7(%arg0: i32) -> (i32, i32) {
    %c0_i32 = arith.constant 0 : i32
    %c0_i32_0 = arith.constant 0 : i32
    %c0_i32_1 = arith.constant 0 : i32
    return %c0_i32, %c0_i32_0 : i32, i32
  }
}

</mosaic_0001>

<bundles_post_ra>
// kernel: tpu_custom_call.1
= control target key start
LH: loop header
LB: loop body
LE: loop exit
PB: predicated region body
PF: predicated region fallthrough
CT: control target
= control target key end

     0   :  { %s2176_s0 = inlined_call_operand.hbm [shape: f32[24,1024], index: 0, kind: input, shape index: {}]   ;;  %s2177_s1 = inlined_call_operand.hbm [shape: f32[3,1,1024], index: 1, kind: input, shape index: {}]   ;;  %s2178_s2 = inlined_call_operand.hbm [shape: f32[3,1,1024], index: 2, kind: input, shape index: {}]   ;;  %s2179_s3 = inlined_call_operand.hbm [shape: f32[1024,128], index: 3, kind: input, shape index: {}]   ;;  %s2180_s4 = inlined_call_operand.vmem [shape: f32[1,128], index: 4, kind: input, shape index: {}]   ;;  %s2181_s5 = inlined_call_operand.hbm [shape: f32[24,128], index: 5, kind: output, shape index: {0}]   ;;  %s2182_s6 = inlined_call_operand.hbm [shape: f32[1,1024], index: 6, kind: output, shape index: {1}]   ;;  %s2183_s7 = inlined_call_operand.hbm [shape: f32[1,1024], index: 7, kind: output, shape index: {2}]  }
   0x1   :  { %2192 = sst [smem:[#allocation25_spill]] %s2177_s1 }
   0x2   :  { %2193 = sst [smem:[#allocation26_spill]] %s2179_s3 }
   0x3   :  { %13 = vsyncpa [#allocation3], 0 }
   0x4   :  { %15 = vsyncpa [#allocation3 + $0x1], 0 }
   0x5   :  { %16 = vsyncpa [#allocation6], 0 }
   0x6   :  { %18 = vsyncpa [#allocation6 + $0x1], 0 }
   0x7   :  { %19 = vsyncpa [#allocation9], 0 }
   0x8   :  { %20 = vsyncpa [#allocation4], 0 }
   0x9   :  { %22 = vsyncpa [#allocation4 + $0x1], 0 }
   0xa   :  { %23 = vsyncpa [#allocation12], 0  ;;  %s1833_s24 = smov 0   ;;  %s1835_s25 = smov 0  }
   0xb   :  { %s1837_s26 = smov 0   ;;  %s1839_s27 = smov 0  }
   0xc LB: > { %2194 = sst [smem:[#allocation19_spill]] %s1774_s24  ;;  %s1854_s28 = sadd.s32 4294967295, %s1786_s27   ;;  %s1786_s27 = sphi %s1839_s27, %s2216_s27   ;;  %s1782_s26 = sphi %s1837_s26, %s2218_s26   ;;  %s1778_s25 = sphi %s1835_s25, %s2220_s25   ;;  %s1774_s24 = sphi %s1833_s24, %s2219_s24  }
   0xd   : > { %2195 = sst [smem:[#allocation20_spill]] %s1782_s26  ;;  %s1415_s29 = sadd.s32 4294967294, %s1786_s27  }
   0xe   : > { %2196 = sst [smem:[#allocation21_spill]] %s1786_s27  ;;  %s1858_s30 = sadd.s32 1, %s1786_s27  }
   0xf   : > { %2197 = sst [smem:[#allocation22_spill]] %s1858_s30  ;;  %s36_s8 = sadd.s32 1, %s1782_s26 }
  0x10   : > { %s33_s9 = ssub.s32 %s1786_s27, %s1858_s30  ;;  %p43_p0 = scmp.ne.s32.totalorder %s1782_s26, %s1778_s25 }
  0x11   : > { %p34_p1 = scmp.eq.s32.totalorder %s33_s9, 0  ;;  %p44_p2 = scmp.eq.s32.totalorder %s1786_s27, 0 }
  0x12   : > { %p49_p3 = scmp.ne.s32.totalorder %s1778_s25, %s1774_s24  ;;  %p2187_p4 = scmp.eq.s32.totalorder %s1854_s28, 2 }
  0x13   : > { %s1870_s10 = scalar_select %p34_p1, %s1782_s26, %s36_s8  }
  0x14   : > { %p45_p5 = por %p44_p2, %p43_p0  ;;  %p1874_p6 = por %p2187_p4, %p43_p0 }
  0x15   : > { %2198 = sst [smem:[#allocation23_spill]] %s1870_s10  ;;  %p173_p7 = scmp.eq.s32.totalorder %s1415_s29, 2 }
  0x16   : > { %p1481_p9 = scmp.lt.s32.totalorder %s1786_s27, 3  ;;  %s1888_s13 = sand.u32 1, %s1782_s26  }
  0x17   : > { %p1883_p10 = por %p173_p7, %p49_p3  ;;  %s272_s15 = sand.u32 1, %s1786_s27  }
  0x18   : > { %p1890_p11 = pnand %p1481_p9, %p45_p5  ;;  %s2188_s16 = sshll.u32 %s1888_s13, 3 }
  0x19   : > { %s2200_s12 = scalar_select %p1883_p10, 1, 0 }
  0x1a   : > { %s1423_s17 = sshll.u32 %s1786_s27, 3  ;;  %s276_s18 = scalar_lea.vmem [#allocation5], %s2188_s16 }
  0x1b   : > { %2201 = sst [smem:[#allocation24_spill]] %s2200_s12  ;;  %s284_s19 = sshll.u32 %s276_s18, 4  ;;  %s285_s19 = int_to_ptr.vmem [resolvable:$true] %s284_s19 }
  0x1c   : > { %s2203_s1 = sld [smem:[#allocation25_spill]]  ;;  %s1905_s9 = scalar_lea.hbm %s2178_s2, %s1423_s17 }
  0x1d   : > { %s1907_s10 = scalar_lea.sflag [#allocation6], %s272_s15  ;;  %p1536_p13 = pneg %p1890_p11 }
  0x22   : > { %s280_s22 = scalar_lea.hbm %s2203_s1, %s1423_s17  ;;  %s1539_s21 = scalar_lea.hbm %s2203_s1, 24 }
  0x23   : > { %s282_s23 = sshll.u32 %s280_s22, 4  ;;  %s283_s23 = int_to_ptr.hbm [resolvable:$true] %s282_s23 }
  0x24   : > { %s1532_s26 = sshra.s32 %s283_s23, 4  ;;  %s1533_s26 = int_to_ptr.hbm [resolvable:$true] %s1532_s26 }
  0x25   : > { %s1534_s30 = scalar_lea.hbm %s1533_s26, 8  ;;  %p1540_p2 = scmp.lt.s32.totalorder %s1533_s26, %s2203_s1 }
  0x26   : > { %p1535_p12 = scmp.ne.s32.totalorder %s1533_s26, %s1534_s30  ;;  %p1541_p5 = scmp.lt.s32.totalorder %s1539_s21, %s1534_s30 }
  0x28   : > { %p1537_p0 = pnand %p1536_p13, %p1535_p12  ;;  %p1542_p7 = por %p1541_p5, %p1540_p2 }
  0x2a   : > { %p1538_p1 = pneg %p1537_p0 }
  0x2c   : > { %p1543_p9 = pnand %p1542_p7, %p1538_p1 }
  0x2e   : > { %1546 = shalt.err (!%p1543_p9)
}
  0x2f   : > { %1472 = dma.hbm_to_vmem [thread:$0]  (!%p1890_p11), %s283_s23, 128, %s285_s19, %s1907_s10  }
  0x30   : > { %p50_p12 = scmp.eq.s32.totalorder %s1854_s28, 0  ;;  %p1416_p0 = scmp.ge.s32.totalorder %s1786_s27, 1 }
  0x31   : > { %p222_p4 = scmp.lt.s32.totalorder %s1786_s27, 4  ;;  %s2204_s3 = sld [smem:[#allocation26_spill]] }
  0x32   : > { %p1934_p1 = por %p50_p12, %p49_p3  ;;  %s1788_s19 = smov [#allocation8]  }
  0x33   : > { %p1938_p2 = pnand %p1416_p0, %p222_p4  ;;  %s235_s23 = sshll.u32 %s1788_s19, 4  ;;  %s236_s23 = int_to_ptr.vmem [resolvable:$true] %s235_s23 }
  0x34   : > { %s1419_s18 = sshll.u32 %s1888_s13, 6  ;;  %s1441_s20 = sshll.u32 %s1786_s27, 6 }
  0x35   : > { %p1462_p5 = pneg %p1938_p2  ;;  %s261_s29 = scalar_lea.hbm %s2176_s0, %s1441_s20 }
  0x36   : > { %s1789_s26 = smov 128   ;;  %s1790_s30 = smov 8  }
  0x37   : > { %s233_s15 = sshll.u32 %s2204_s3, 4  ;;  %p1463_p7 = pnand %p1462_p5, %p50_p12  ;;  %s234_s15 = int_to_ptr.hbm [resolvable:$true] %s233_s15 }
  0x38   : > { %s263_s16 = sshll.u32 %s261_s29, 4  ;;  %s256_s1 = scalar_lea.vmem [#allocation2], %s1419_s18  ;;  %s264_s16 = int_to_ptr.hbm [resolvable:$true] %s263_s16 }
  0x39   : > { %1465 = dma.hbm_to_vmem [thread:$0]  (!%p1463_p7), %s234_s15, 16384, %s236_s23, [#allocation9], %s1789_s26, %s1789_s26, %s1790_s30  }
  0x3a   : > { %s265_s3 = sshll.u32 %s256_s1, 4  ;;  %s253_s19 = scalar_lea.sflag [#allocation3], %s1888_s13  ;;  %s266_s3 = int_to_ptr.vmem [resolvable:$true] %s265_s3 }
  0x3b   : > { %s1592_s12 = sshra.s32 %s264_s16, 4  ;;  %s1599_s20 = scalar_lea.hbm %s2176_s0, 192  ;;  %s1593_s12 = int_to_ptr.hbm [resolvable:$true] %s1592_s12 }
  0x3c   : > { %s1594_s24 = scalar_lea.hbm %s1593_s12, 64  ;;  %p1600_p0 = scmp.lt.s32.totalorder %s1593_s12, %s2176_s0 }
  0x3d   : > { %p1595_p3 = scmp.ne.s32.totalorder %s1593_s12, %s1594_s24  ;;  %p1601_p5 = scmp.lt.s32.totalorder %s1599_s20, %s1594_s24 }
  0x3f   : > { %p1597_p4 = pnand %p1595_p3, %p1536_p13  ;;  %p1602_p7 = por %p1601_p5, %p1600_p0 }
  0x41   : > { %p1598_p9 = pneg %p1597_p4 }
  0x43   : > { %p1603_p8 = pnand %p1602_p7, %p1598_p9 }
  0x45   : > { %1606 = shalt.err (!%p1603_p8)
}
  0x46   : > { %1469 = dma.hbm_to_vmem [thread:$0]  (!%p1890_p11), %s264_s16, 1024, %s266_s3, %s253_s19  }
  0x47   : > { %s301_s1 = sshll.u32 %s1905_s9, 4  ;;  %s2207_s23 = sshll.u32 %s1888_s13, 3  ;;  %s302_s1 = int_to_ptr.hbm [resolvable:$true] %s301_s1 }
  0x48   : > { %s295_s18 = scalar_lea.vmem [#allocation7], %s2207_s23  ;;  %s1622_s27 = sshra.s32 %s302_s1, 4  ;;  %s1623_s27 = int_to_ptr.hbm [resolvable:$true] %s1622_s27 }
  0x49   : > { %s303_s29 = sshll.u32 %s295_s18, 4  ;;  %s1624_s26 = scalar_lea.hbm %s1623_s27, 8  ;;  %s304_s29 = int_to_ptr.vmem [resolvable:$true] %s303_s29 }
  0x4a   : > { %p1625_p3 = scmp.ne.s32.totalorder %s1623_s27, %s1624_s26  ;;  %s1629_s30 = scalar_lea.hbm %s2178_s2, 24 }
  0x4b   : > { %p1630_p9 = scmp.lt.s32.totalorder %s1623_s27, %s2178_s2  ;;  %p1631_p0 = scmp.lt.s32.totalorder %s1629_s30, %s1624_s26 }
  0x4c   : > { %p1627_p4 = pnand %p1625_p3, %p1536_p13 }
  0x4d   : > { %p1632_p5 = por %p1631_p0, %p1630_p9 }
  0x4e   : > { %p1628_p8 = pneg %p1627_p4 }
  0x50   : > { %p1633_p7 = pnand %p1632_p5, %p1628_p8 }
  0x52   : > { %1636 = shalt.err (!%p1633_p7)
}
  0x53   : > { %1475 = dma.hbm_to_vmem [thread:$0]  (!%p1890_p11), %s302_s1, 128, %s304_s29, %s1907_s10  }
  0x54   : > { %312 = sbr.rel (%p1938_p2) target bundleno = 992 (0x3e0), region = 40  ;;  %s1981_s13 = sand.u32 (!%p1938_p2), 1, %s1778_s25  }
  0x55   : > { %s1427_s16 = sshll.u32 (!%p1938_p2), %s1981_s13, 6  ;;  %s315_s9 = scalar_lea.sflag (!%p1938_p2), [#allocation3], %s1981_s13 }
  0x56   : > { %s1985_s19 = scalar_lea.vmem (!%p1938_p2), [#allocation2], %s1427_s16 }
  0x59   : > { %1753 = dma.done.wait (%p1934_p1), %s315_s9, 1024  }
  0x5a   : > { %1755 = vsyncadd (%p1934_p1), %s315_s9, 4294966272  ;;  %s324_s10 = sand.u32 1, %s1854_s28   ;;  %s1993_s14 = sshll.u32 %s1981_s13, 3 }
  0x5b   : > { %s325_s8 = scalar_lea.sflag [#allocation6], %s324_s10  ;;  %s328_s20 = scalar_lea.vmem [#allocation5], %s1993_s14 }
  0x5c   : > { %1757 = dma.done.wait (%p1934_p1), %s325_s8, 256  }
  0x5d   : > { %1759 = vsyncadd (%p1934_p1), %s325_s8, 4294967040  ;;  %s338_s22 = scalar_lea.vmem [#allocation7], %s1993_s14 }
  0x5e   : > { %1761 = dma.done.wait (%p50_p12), [#allocation9], 16384  }
  0x5f   : > { %1763 = vsyncadd (%p50_p12), [#allocation9], 4294950912  ;;  %v492_v0 = vld [vmem:[#allocation8 + $0x178] sm:$0xff]  ;;  %v491_v2 = vld [vmem:[#allocation8 + $0x170] sm:$0xff]  ;;  %s380_s1 = scalar_lea.vmem [#allocation10], %s1993_s14  ;;  %p2208_p11 = scmp.ne.s32.totalorder %s1854_s28, 0 }
  0x60   : > { %v460_v1 = vld [vmem:[#allocation8 + $0x78] sm:$0xff]  ;;  %617 = vmatpush.msra.mxu2 %v492_v0  ;;  %v459_v4 = vld [vmem:[#allocation8 + $0x70] sm:$0xff]  ;;  %v490_v6 = vld [vmem:[#allocation8 + $0x168] sm:$0xff] }
  0x61   : > { %577 = vmatpush.msra.mxu0 %v460_v1  ;;  %v508_v3 = vld [vmem:[#allocation8 + $0x1f8] sm:$0xff]  ;;  %v507_v7 = vld [vmem:[#allocation8 + $0x1f0] sm:$0xff]  ;;  %v458_v8 = vld [vmem:[#allocation8 + $0x68] sm:$0xff] }
  0x62   : > { %v476_v5 = vld [vmem:[#allocation8 + $0xf8] sm:$0xff]  ;;  %637 = vmatpush.msra.mxu3 %v508_v3  ;;  %618 = vmatpush.msra.mxu2 %v491_v2  ;;  %v475_v9 = vld [vmem:[#allocation8 + $0xf0] sm:$0xff]  ;;  %v506_v10 = vld [vmem:[#allocation8 + $0x1e8] sm:$0xff] }
  0x63   : > { %597 = vmatpush.msra.mxu1 %v476_v5  ;;  %578 = vmatpush.msra.mxu0 %v459_v4  ;;  %v489_v11 = vld [vmem:[#allocation8 + $0x160] sm:$0xff]  ;;  %v474_v13 = vld [vmem:[#allocation8 + $0xe8] sm:$0xff]  ;;  %v488_v16 = vld [vmem:[#allocation8 + $0x158] sm:$0xff] }
  0x64   : > { %638 = vmatpush.msra.mxu3 %v507_v7  ;;  %v457_v12 = vld [vmem:[#allocation8 + $0x60] sm:$0xff]  ;;  %619 = vmatpush.msra.mxu2 %v490_v6  ;;  %v456_v17 = vld [vmem:[#allocation8 + $0x58] sm:$0xff]  ;;  %v487_v20 = vld [vmem:[#allocation8 + $0x150] sm:$0xff] }
  0x65   : > { %598 = vmatpush.msra.mxu1 %v475_v9  ;;  %579 = vmatpush.msra.mxu0 %v458_v8  ;;  %v505_v14 = vld [vmem:[#allocation8 + $0x1e0] sm:$0xff]  ;;  %v504_v18 = vld [vmem:[#allocation8 + $0x1d8] sm:$0xff]  ;;  %v455_v21 = vld [vmem:[#allocation8 + $0x50] sm:$0xff] }
  0x66   : > { %v473_v15 = vld [vmem:[#allocation8 + $0xe0] sm:$0xff]  ;;  %639 = vmatpush.msra.mxu3 %v506_v10  ;;  %620 = vmatpush.msra.mxu2 %v489_v11  ;;  %v472_v19 = vld [vmem:[#allocation8 + $0xd8] sm:$0xff]  ;;  %v503_v22 = vld [vmem:[#allocation8 + $0x1d0] sm:$0xff] }
  0x67   : > { %599 = vmatpush.msra.mxu1 %v474_v13  ;;  %580 = vmatpush.msra.mxu0 %v457_v12  ;;  %v471_v23 = vld [vmem:[#allocation8 + $0xd0] sm:$0xff]  ;;  %v486_v24 = vld [vmem:[#allocation8 + $0x148] sm:$0xff]  ;;  %v485_v28 = vld [vmem:[#allocation8 + $0x140] sm:$0xff] }
  0x68   : > { %640 = vmatpush.msra.mxu3 %v505_v14  ;;  %621 = vmatpush.msra.mxu2 %v488_v16  ;;  %v454_v25 = vld [vmem:[#allocation8 + $0x48] sm:$0xff]  ;;  %v453_v29 = vld [vmem:[#allocation8 + $0x40] sm:$0xff]  ;;  %v484_v32 = vld [vmem:[#allocation8 + $0x138] sm:$0xff] }
  0x69   : > { %600 = vmatpush.msra.mxu1 %v473_v15  ;;  %581 = vmatpush.msra.mxu0 %v456_v17  ;;  %v502_v26 = vld [vmem:[#allocation8 + $0x1c8] sm:$0xff]  ;;  %v501_v30 = vld [vmem:[#allocation8 + $0x1c0] sm:$0xff]  ;;  %v452_v33 = vld [vmem:[#allocation8 + $0x38] sm:$0xff] }
  0x6a   : > { %641 = vmatpush.msra.mxu3 %v504_v18  ;;  %622 = vmatpush.msra.mxu2 %v487_v20  ;;  %v470_v27 = vld [vmem:[#allocation8 + $0xc8] sm:$0xff]  ;;  %v469_v31 = vld [vmem:[#allocation8 + $0xc0] sm:$0xff]  ;;  %v500_v34 = vld [vmem:[#allocation8 + $0x1b8] sm:$0xff] }
  0x6b   : > { %601 = vmatpush.msra.mxu1 %v472_v19  ;;  %582 = vmatpush.msra.mxu0 %v455_v21  ;;  %v468_v35 = vld [vmem:[#allocation8 + $0xb8] sm:$0xff]  ;;  %v483_v36 = vld [vmem:[#allocation8 + $0x130] sm:$0xff]  ;;  %v482_v40 = vld [vmem:[#allocation8 + $0x128] sm:$0xff] }
  0x6c   : > { %642 = vmatpush.msra.mxu3 %v503_v22  ;;  %623 = vmatpush.msra.mxu2 %v486_v24  ;;  %v451_v37 = vld [vmem:[#allocation8 + $0x30] sm:$0xff]  ;;  %v450_v41 = vld [vmem:[#allocation8 + $0x28] sm:$0xff]  ;;  %v481_v44 = vld [vmem:[#allocation8 + $0x120] sm:$0xff] }
  0x6d   : > { %602 = vmatpush.msra.mxu1 %v471_v23  ;;  %583 = vmatpush.msra.mxu0 %v454_v25  ;;  %v499_v38 = vld [vmem:[#allocation8 + $0x1b0] sm:$0xff]  ;;  %v498_v42 = vld [vmem:[#allocation8 + $0x1a8] sm:$0xff]  ;;  %v449_v45 = vld [vmem:[#allocation8 + $0x20] sm:$0xff] }
  0x6e   : > { %643 = vmatpush.msra.mxu3 %v502_v26  ;;  %624 = vmatpush.msra.mxu2 %v485_v28  ;;  %v467_v39 = vld [vmem:[#allocation8 + $0xb0] sm:$0xff]  ;;  %v466_v43 = vld [vmem:[#allocation8 + $0xa8] sm:$0xff]  ;;  %v497_v46 = vld [vmem:[#allocation8 + $0x1a0] sm:$0xff] }
  0x6f   : > { %603 = vmatpush.msra.mxu1 %v470_v27  ;;  %584 = vmatpush.msra.mxu0 %v453_v29  ;;  %v465_v47 = vld [vmem:[#allocation8 + $0xa0] sm:$0xff]  ;;  %v480_v48 = vld [vmem:[#allocation8 + $0x118] sm:$0xff]  ;;  %v479_v52 = vld [vmem:[#allocation8 + $0x110] sm:$0xff] }
  0x70   : > { %644 = vmatpush.msra.mxu3 %v501_v30  ;;  %625 = vmatpush.msra.mxu2 %v484_v32  ;;  %v448_v49 = vld [vmem:[#allocation8 + $0x18] sm:$0xff]  ;;  %v447_v53 = vld [vmem:[#allocation8 + $0x10] sm:$0xff]  ;;  %v478_v56 = vld [vmem:[#allocation8 + $0x108] sm:$0xff] }
  0x71   : > { %604 = vmatpush.msra.mxu1 %v469_v31  ;;  %585 = vmatpush.msra.mxu0 %v452_v33  ;;  %v496_v50 = vld [vmem:[#allocation8 + $0x198] sm:$0xff]  ;;  %v495_v54 = vld [vmem:[#allocation8 + $0x190] sm:$0xff]  ;;  %v446_v57 = vld [vmem:[#allocation8 + $0x8] sm:$0xff] }
  0x72   : > { %645 = vmatpush.msra.mxu3 %v500_v34  ;;  %626 = vmatpush.msra.mxu2 %v483_v36  ;;  %v464_v51 = vld [vmem:[#allocation8 + $0x98] sm:$0xff]  ;;  %v463_v55 = vld [vmem:[#allocation8 + $0x90] sm:$0xff]  ;;  %v494_v58 = vld [vmem:[#allocation8 + $0x188] sm:$0xff] }
  0x73   : > { %605 = vmatpush.msra.mxu1 %v468_v35  ;;  %586 = vmatpush.msra.mxu0 %v451_v37  ;;  %v462_v59 = vld [vmem:[#allocation8 + $0x88] sm:$0xff]  ;;  %v477_v60 = vld [vmem:[#allocation8 + $0x100] sm:$0xff]  ;;  %v556_v62 = vld [vmem:[#allocation8 + $0x378] sm:$0xff] }
  0x74   : > { %646 = vmatpush.msra.mxu3 %v499_v38  ;;  %627 = vmatpush.msra.mxu2 %v482_v40  ;;  %v445_v61 = vld [vmem:[#allocation8] sm:$0xff]  ;;  %v524_v0 = vld [vmem:[#allocation8 + $0x278] sm:$0xff]  ;;  %v555_v2 = vld [vmem:[#allocation8 + $0x370] sm:$0xff] }
  0x75   : > { %606 = vmatpush.msra.mxu1 %v467_v39  ;;  %587 = vmatpush.msra.mxu0 %v450_v41  ;;  %v493_v63 = vld [vmem:[#allocation8 + $0x180] sm:$0xff]  ;;  %v572_v1 = vld [vmem:[#allocation8 + $0x3f8] sm:$0xff]  ;;  %v523_v4 = vld [vmem:[#allocation8 + $0x270] sm:$0xff] }
  0x76   : > { %647 = vmatpush.msra.mxu3 %v498_v42  ;;  %628 = vmatpush.msra.mxu2 %v481_v44  ;;  %v461_v3 = vld [vmem:[#allocation8 + $0x80] sm:$0xff]  ;;  %v540_v5 = vld [vmem:[#allocation8 + $0x2f8] sm:$0xff]  ;;  %v554_v6 = vld [vmem:[#allocation8 + $0x368] sm:$0xff] }
  0x77   : > { %607 = vmatpush.msra.mxu1 %v466_v43  ;;  %588 = vmatpush.msra.mxu0 %v449_v45  ;;  %v571_v7 = vld [vmem:[#allocation8 + $0x3f0] sm:$0xff]  ;;  %v522_v8 = vld [vmem:[#allocation8 + $0x268] sm:$0xff]  ;;  %v553_v10 = vld [vmem:[#allocation8 + $0x360] sm:$0xff] }
  0x78   : > { %648 = vmatpush.msra.mxu3 %v497_v46  ;;  %629 = vmatpush.msra.mxu2 %v480_v48  ;;  %v539_v9 = vld [vmem:[#allocation8 + $0x2f0] sm:$0xff]  ;;  %v570_v11 = vld [vmem:[#allocation8 + $0x3e8] sm:$0xff]  ;;  %v521_v12 = vld [vmem:[#allocation8 + $0x260] sm:$0xff] }
  0x79   : > { %608 = vmatpush.msra.mxu1 %v465_v47  ;;  %589 = vmatpush.msra.mxu0 %v448_v49  ;;  %v538_v13 = vld [vmem:[#allocation8 + $0x2e8] sm:$0xff]  ;;  %v552_v14 = vld [vmem:[#allocation8 + $0x358] sm:$0xff]  ;;  %v569_v15 = vld [vmem:[#allocation8 + $0x3e0] sm:$0xff] }
  0x7a   : > { %649 = vmatpush.msra.mxu3 %v496_v50  ;;  %630 = vmatpush.msra.mxu2 %v479_v52  ;;  %v520_v16 = vld [vmem:[#allocation8 + $0x258] sm:$0xff]  ;;  %v537_v17 = vld [vmem:[#allocation8 + $0x2e0] sm:$0xff]  ;;  %v551_v18 = vld [vmem:[#allocation8 + $0x350] sm:$0xff] }
  0x7b   : > { %609 = vmatpush.msra.mxu1 %v464_v51  ;;  %590 = vmatpush.msra.mxu0 %v447_v53  ;;  %v568_v19 = vld [vmem:[#allocation8 + $0x3d8] sm:$0xff]  ;;  %v519_v20 = vld [vmem:[#allocation8 + $0x250] sm:$0xff]  ;;  %v2007_v22 = vld [vmem:[%s328_s20] sm:$0xff] }
  0x7c   : > { %650 = vmatpush.msra.mxu3 %v495_v54  ;;  %631 = vmatpush.msra.mxu2 %v478_v56  ;;  %v536_v21 = vld [vmem:[#allocation8 + $0x2d8] sm:$0xff]  ;;  %v550_v23 = vld [vmem:[#allocation8 + $0x348] sm:$0xff]  ;;  %v567_v24 = vld [vmem:[#allocation8 + $0x3d0] sm:$0xff]  ;;  %v397_v30 = vperm.slane %v2007_v22, 2  ;;  %v395_v37 = vperm.slane %v2007_v22, 0  ;;  %v398_v40 = vperm.slane %v2007_v22, 3 }
  0x7d   : > { %610 = vmatpush.msra.mxu1 %v463_v55  ;;  %591 = vmatpush.msra.mxu0 %v446_v57  ;;  %v518_v25 = vld [vmem:[#allocation8 + $0x248] sm:$0xff]  ;;  %v535_v26 = vld [vmem:[#allocation8 + $0x2d0] sm:$0xff]  ;;  %v549_v27 = vld [vmem:[#allocation8 + $0x340] sm:$0xff]  ;;  %v396_v48 = vperm.slane %v2007_v22, 1 }
  0x7e   : > { %651 = vmatpush.msra.mxu3 %v494_v58  ;;  %632 = vmatpush.msra.mxu2 %v477_v60  ;;  %v566_v28 = vld [vmem:[#allocation8 + $0x3c8] sm:$0xff]  ;;  %v517_v29 = vld [vmem:[#allocation8 + $0x240] sm:$0xff]  ;;  %v2011_v32 = vld [vmem:[%s1985_s19 + $0x10] sm:$0xff] }
  0x7f   : > { %611 = vmatpush.msra.mxu1 %v462_v59  ;;  %592 = vmatpush.msra.mxu0 %v445_v61  ;;  %v534_v31 = vld [vmem:[#allocation8 + $0x2c8] sm:$0xff]  ;;  %v2015_v33 = vld [vmem:[%s338_s22] sm:$0xff]  ;;  %v565_v35 = vld [vmem:[#allocation8 + $0x3c0] sm:$0xff]  ;;  %v413_v43 = vmul.f32 %v397_v30, %v2011_v32 }
  0x80   : > { %697 = vmatpush.msrb.mxu2 %v556_v62  ;;  %652 = vmatpush.msra.mxu3 %v493_v63  ;;  %v548_v34 = vld [vmem:[#allocation8 + $0x338] sm:$0xff]  ;;  %v533_v38 = vld [vmem:[#allocation8 + $0x2c0] sm:$0xff]  ;;  %v547_v41 = vld [vmem:[#allocation8 + $0x330] sm:$0xff]  ;;  %v423_v44 = vperm.slane %v2015_v33, 2  ;;  %v421_v52 = vperm.slane %v2015_v33, 0  ;;  %v424_v57 = vperm.slane %v2015_v33, 3 }
  0x81   : > { %657 = vmatpush.msrb.mxu0 %v524_v0  ;;  %612 = vmatpush.msra.mxu1 %v461_v3  ;;  %v516_v36 = vld [vmem:[#allocation8 + $0x238] sm:$0xff]  ;;  %v2019_v39 = vld [vmem:[%s1985_s19] sm:$0xff]  ;;  %v515_v46 = vld [vmem:[#allocation8 + $0x230] sm:$0xff]  ;;  %v422_v63 = vperm.slane %v2015_v33, 1  ;;  %v401_v3 = vperm.slane %v2007_v22, 6 }
  0x82   : > { %717 = vmatpush.msrb.mxu3 %v572_v1  ;;  %698 = vmatpush.msrb.mxu2 %v555_v2  ;;  %v564_v42 = vld [vmem:[#allocation8 + $0x3b8] sm:$0xff]  ;;  %v546_v49 = vld [vmem:[#allocation8 + $0x328] sm:$0xff]  ;;  %v563_v50 = vld [vmem:[#allocation8 + $0x3b0] sm:$0xff]  ;;  %v411_v51 = vmul.f32 %v395_v37, %v2019_v39  ;;  %v439_v60 = vadd.f32 %v423_v44, %v413_v43 }
  0x83   : > { %658 = vmatpush.msrb.mxu0 %v523_v4  ;;  %677 = vmatpush.msrb.mxu1 %v540_v5  ;;  %v2025_v45 = vld [vmem:[%s1985_s19 + $0x18] sm:$0xff]  ;;  %v2031_v53 = vld [vmem:[%s1985_s19 + $0x8] sm:$0xff]  ;;  %v531_v55 = vld [vmem:[#allocation8 + $0x2b0] sm:$0xff] }
  0x84   : > { %699 = vmatpush.msrb.mxu2 %v554_v6  ;;  %718 = vmatpush.msrb.mxu3 %v571_v7  ;;  %v532_v47 = vld [vmem:[#allocation8 + $0x2b8] sm:$0xff]  ;;  %v514_v54 = vld [vmem:[#allocation8 + $0x228] sm:$0xff]  ;;  %v414_v56 = vmul.f32 %v398_v40, %v2025_v45  ;;  %v545_v58 = vld [vmem:[#allocation8 + $0x320] sm:$0xff]  ;;  %v412_v62 = vmul.f32 %v396_v48, %v2031_v53  ;;  %v437_v2 = vadd.f32 %v421_v52, %v411_v51 }
  0x85   : > { %659 = vmatpush.msrb.mxu0 %v522_v8  ;;  %678 = vmatpush.msrb.mxu1 %v539_v9  ;;  %v562_v59 = vld [vmem:[#allocation8 + $0x3a8] sm:$0xff]  ;;  %v513_v61 = vld [vmem:[#allocation8 + $0x220] sm:$0xff]  ;;  %v544_v1 = vld [vmem:[#allocation8 + $0x318] sm:$0xff]  ;;  %v399_v9 = vperm.slane %v2007_v22, 4 }
  0x86   : > { %700 = vmatpush.msrb.mxu2 %v553_v10  ;;  %719 = vmatpush.msrb.mxu3 %v570_v11  ;;  %v530_v0 = vld [vmem:[#allocation8 + $0x2a8] sm:$0xff]  ;;  %v561_v4 = vld [vmem:[#allocation8 + $0x3a0] sm:$0xff]  ;;  %v440_v5 = vadd.f32 %v424_v57, %v414_v56  ;;  %v2039_v6 = vld [vmem:[%s1985_s19 + $0x30] sm:$0xff]  ;;  %v402_v10 = vperm.slane %v2007_v22, 7 }
  0x87   : > { %660 = vmatpush.msrb.mxu0 %v521_v12  ;;  %679 = vmatpush.msrb.mxu1 %v538_v13  ;;  %v512_v7 = vld [vmem:[#allocation8 + $0x218] sm:$0xff]  ;;  %v529_v8 = vld [vmem:[#allocation8 + $0x2a0] sm:$0xff]  ;;  %v543_v11 = vld [vmem:[#allocation8 + $0x310] sm:$0xff]  ;;  %v438_v12 = vadd.f32 %v422_v63, %v412_v62 }
  0x88   : > { %701 = vmatpush.msrb.mxu2 %v552_v14  ;;  %720 = vmatpush.msrb.mxu3 %v569_v15  ;;  %v2044_v13 = vld [vmem:[%s1985_s19 + $0x20] sm:$0xff]  ;;  %v2047_v14 = vld [vmem:[%s1985_s19 + $0x38] sm:$0xff] }
  0x89   : > { %661 = vmatpush.msrb.mxu0 %v520_v16  ;;  %680 = vmatpush.msrb.mxu1 %v537_v17  ;;  %v560_v15 = vld [vmem:[#allocation8 + $0x398] sm:$0xff]  ;;  %v417_v16 = vmul.f32 %v401_v3, %v2039_v6  ;;  %v427_v17 = vperm.slane %v2015_v33, 6  ;;  %v541_v30 = vld [vmem:[#allocation8 + $0x300] sm:$0xff] }
  0x8a   : > { %702 = vmatpush.msrb.mxu2 %v551_v18  ;;  %721 = vmatpush.msrb.mxu3 %v568_v19  ;;  %v400_v18 = vperm.slane %v2007_v22, 5  ;;  %v511_v19 = vld [vmem:[#allocation8 + $0x210] sm:$0xff]  ;;  %v510_v22 = vld [vmem:[#allocation8 + $0x208] sm:$0xff]  ;;  %v509_v37 = vld [vmem:[#allocation8 + $0x200] sm:$0xff] }
  0x8b   : > { %662 = vmatpush.msrb.mxu0 %v519_v20  ;;  %681 = vmatpush.msrb.mxu1 %v536_v21  ;;  %v528_v20 = vld [vmem:[#allocation8 + $0x298] sm:$0xff]  ;;  %v2053_v21 = vld [vmem:[%s1985_s19 + $0x28] sm:$0xff]  ;;  %v557_v40 = vld [vmem:[#allocation8 + $0x380] sm:$0xff] }
  0x8c   : > { %703 = vmatpush.msrb.mxu2 %v550_v23  ;;  %722 = vmatpush.msrb.mxu3 %v567_v24  ;;  %v542_v23 = vld [vmem:[#allocation8 + $0x308] sm:$0xff]  ;;  %v559_v24 = vld [vmem:[#allocation8 + $0x390] sm:$0xff]  ;;  %v525_v43 = vld [vmem:[#allocation8 + $0x280] sm:$0xff] }
  0x8d   : > { %663 = vmatpush.msrb.mxu0 %v518_v25  ;;  %682 = vmatpush.msrb.mxu1 %v535_v26  ;;  %v415_v25 = vmul.f32 %v399_v9, %v2044_v13  ;;  %v425_v26 = vperm.slane %v2015_v33, 4 }
  0x8e   : > { %704 = vmatpush.msrb.mxu2 %v549_v27  ;;  %723 = vmatpush.msrb.mxu3 %v566_v28  ;;  %v418_v27 = vmul.f32 %v402_v10, %v2047_v14  ;;  %v428_v28 = vperm.slane %v2015_v33, 7 }
  0x8f   : > { %664 = vmatpush.msrb.mxu0 %v517_v29  ;;  %683 = vmatpush.msrb.mxu1 %v534_v31  ;;  %v527_v29 = vld [vmem:[#allocation8 + $0x290] sm:$0xff]  ;;  %v558_v31 = vld [vmem:[#allocation8 + $0x388] sm:$0xff] }
  0x90   : > { %705 = vmatpush.msrb.mxu2 %v548_v34  ;;  %724 = vmatpush.msrb.mxu3 %v565_v35  ;;  %v443_v34 = vadd.f32 %v427_v17, %v417_v16  ;;  %v416_v35 = vmul.f32 %v400_v18, %v2053_v21 }
  0x91   : > { %665 = vmatpush.msrb.mxu0 %v516_v36  ;;  %684 = vmatpush.msrb.mxu1 %v533_v38  ;;  %v426_v36 = vperm.slane %v2015_v33, 5  ;;  %v526_v38 = vld [vmem:[#allocation8 + $0x288] sm:$0xff]  ;;  %v1525_v33 = vld [vmem:[%s2180_s4] ss:$0 sm:$0xff] }
  0x92   : > { %706 = vmatpush.msrb.mxu2 %v547_v41  ;;  %725 = vmatpush.msrb.mxu3 %v564_v42  ;;  %v441_v41 = vadd.f32 %v425_v26, %v415_v25  ;;  %v444_v42 = vadd.f32 %v428_v28, %v418_v27 }
  0x93   : > { %666 = vmatpush.msrb.mxu0 %v515_v46  ;;  %685 = vmatpush.msrb.mxu1 %v532_v47  ;;  %v442_v44 = vadd.f32 %v426_v36, %v416_v35 }
  0x94   : > { %707 = vmatpush.msrb.mxu2 %v546_v49  ;;  %726 = vmatpush.msrb.mxu3 %v563_v50 }
  0x95   : > { %667 = vmatpush.msrb.mxu0 %v514_v54  ;;  %686 = vmatpush.msrb.mxu1 %v531_v55  ;;  %v737_v55 = vlaneseq }
  0x96   : > { %708 = vmatpush.msrb.mxu2 %v545_v58  ;;  %727 = vmatpush.msrb.mxu3 %v562_v59 }
  0x97   : > { %633 = vmatmul.f32.vlgmr.msra.gmra.mxu2 %v439_v60  ;;  %668 = vmatpush.msrb.mxu0 %v513_v61  ;;  %v738_v59 = vand.u32 127, %v737_v55 }
  0x98   : > { %687 = vmatpush.msrb.mxu1 %v530_v0  ;;  %709 = vmatpush.msrb.mxu2 %v544_v1 }
  0x99   : > { %728 = vmatpush.msrb.mxu3 %v561_v4  ;;  %593 = vmatmul.f32.vlgmr.msra.gmra.mxu0 %v437_v2  ;;  %vm739_vm0 = vcmp.lt.s32.totalorder %v738_v59, 10  ;;  %vm772_vm5 = vcmp.eq.s32.totalorder %v738_v59, 10 }
  0x9a   : > { %653 = vmatmul.f32.vlgmr.msra.gmra.mxu3 %v440_v5  ;;  %669 = vmatpush.msrb.mxu0 %v512_v7 }
  0x9b   : > { %688 = vmatpush.msrb.mxu1 %v529_v8  ;;  %710 = vmatpush.msrb.mxu2 %v543_v11 }
  0x9c   : > { %729 = vmatpush.msrb.mxu3 %v560_v15  ;;  %613 = vmatmul.f32.vlgmr.msra.gmra.mxu1 %v438_v12 }
  0x9d   : > { %670 = vmatpush.msrb.mxu0 %v511_v19  ;;  %689 = vmatpush.msrb.mxu1 %v528_v20 }
  0x9e   : > { %711 = vmatpush.msrb.mxu2 %v542_v23  ;;  %730 = vmatpush.msrb.mxu3 %v559_v24 }
  0x9f   : > { %671 = vmatpush.msrb.mxu0 %v510_v22  ;;  %690 = vmatpush.msrb.mxu1 %v527_v29 }
  0xa0   : > { %712 = vmatpush.msrb.mxu2 %v541_v30  ;;  %731 = vmatpush.msrb.mxu3 %v558_v31 }
  0xa1   : > { %713 = vmatmul.f32.vlgmr.msrb.gmra.mxu2 %v443_v34  ;;  %672 = vmatpush.msrb.mxu0 %v509_v37 }
  0xa2   : > { %691 = vmatpush.msrb.mxu1 %v526_v38  ;;  %732 = vmatpush.msrb.mxu3 %v557_v40 }
  0xa3   : > { %673 = vmatmul.f32.vlgmr.msrb.gmra.mxu0 %v441_v41  ;;  %733 = vmatmul.f32.vlgmr.msrb.gmra.mxu3 %v444_v42 }
  0xa4   : > { %692 = vmatpush.msrb.mxu1 %v525_v43 }
  0xa5   : > { %693 = vmatmul.f32.vlgmr.msrb.gmra.mxu1 %v442_v44 }
 0x116   : > { %v594_v46 = vpop.f32.mrf.mxu0 }
 0x117   : > { %v595_v47 = vadd.f32 %v1525_v33, %v594_v46 }
 0x119   : > { %v614_v48 = vpop.f32.mrf.mxu1 }
 0x11a   : > { %v615_v49 = vadd.f32 %v614_v48, %v595_v47  ;;  %v634_v50 = vpop.f32.mrf.mxu2 }
 0x11c   : > { %v635_v51 = vadd.f32 %v634_v50, %v615_v49 }
 0x11d   : > { %v654_v52 = vpop.f32.mrf.mxu3 }
 0x11e   : > { %v655_v54 = vadd.f32 %v654_v52, %v635_v51 }
 0x120   : > { %v674_v56 = vpop.f32.mrf.mxu0 }
 0x121   : > { %v675_v57 = vadd.f32 %v674_v56, %v655_v54 }
 0x122   : > { %v694_v58 = vpop.f32.mrf.mxu1 }
 0x123   : > { %v695_v60 = vadd.f32 %v694_v58, %v675_v57 }
 0x124   : > { %v714_v61 = vpop.f32.mrf.mxu2 }
 0x125   : > { %v715_v62 = vadd.f32 %v714_v61, %v695_v60 }
 0x126   : > { %v734_v63 = vpop.f32.mrf.mxu3 }
 0x127   : > { %v735_v0 = vadd.f32 %v734_v63, %v715_v62 }
 0x129   : > { %v740_v1 = vsel %vm739_vm0, %v735_v0, -1e+30 }
 0x12a   : > { %741 = vmax.xlane.f32.xlu0 %v740_v1 }
 0x19d   : > { %v742_v2 = vpop.xlane.xlu0 %741 }
 0x19e   : > { %v743_v3 = vsub.f32 %v740_v1, %v742_v2 }
 0x1a0   : > { %v744_v4 = vmul.f32 1.442695, %v743_v3 }
 0x1a2   : > { %1526 = vpow2.f32 %v744_v4 }
 0x1a8   : > { %v1527_v5 = vpop.eup %1526 }
 0x1a9   : > { %v746_v7 = vsel %vm739_vm0, %v1527_v5, 0.0 }
 0x1aa   : > { %747 = vadd.xlane.f32.xlu0 %v746_v7 }
 0x21d   : > { %v748_v8 = vpop.xlane.xlu0 %747 }
 0x21e   : > { %1528 = vrcp.f32 %v748_v8  ;;  %v760_v15 = vand.u32 2147483648, %v748_v8  ;;  %v758_v18 = vand.u32 2147483647, %v748_v8  ;;  %vm754_vm2 = vweird.f32 %v748_v8 }
 0x21f   : > { %1530 = vlog2.f32 %v748_v8 }
 0x220   : > { %v761_v20 = vor.u32 1.1754944e-38, %v760_v15  ;;  %vm759_vm4 = vcmp.eq.f32.partialorder %v758_v18, 8.507059e+37 }
 0x224   : > { %v1529_v9 = vpop.eup %1528 }
 0x225   : > { %v1531_v10 = vpop.eup %1530  ;;  %v750_v11 = vmul.f32 %v1529_v9, %v748_v8  ;;  %vm755_vm1 = vweird.f32 %v1529_v9 }
 0x226   : > { %v765_v16 = vmul.f32 0.6931472, %v1531_v10  ;;  %vm756_vm3 = vmor %vm754_vm2, %vm755_vm1 }
 0x227   : > { %v751_v12 = vsub.f32 1.0, %v750_v11 }
 0x228   : > { %v766_v23 = vsub.f32 %v743_v3, %v765_v16 }
 0x229   : > { %v752_v17 = vmul.f32 %v1529_v9, %v751_v12 }
 0x22a   : > { %v2069_v27 = vsel %vm739_vm0, %v766_v23, 0.0 }
 0x22b   : > { %v753_v19 = vadd.f32 %v1529_v9, %v752_v17 }
 0x22d   : > { %v757_v24 = vsel %vm756_vm3, %v1529_v9, %v753_v19 }
 0x22e   : > { %v762_v25 = vsel %vm759_vm4, %v761_v20, %v757_v24 }
 0x22f   : > { %v2066_v26 = vmul.f32 %v762_v25, %v746_v7 }
 0x231   : > { %v768_v28 = vmul.f32 %v2069_v27, %v2066_v26 }
 0x233   : > { %769 = vadd.xlane.f32.xlu1 %v768_v28 }
 0x2a6   : > { %v2073_v22 = vpop.xlane.xlu1 %769  ;;  %778 = sbr.rel (%p2208_p11) target bundleno = 966 (0x3c6), region = 60 }
 0x2a7   : > { %v771_v29 = vsub.f32 0.0, %v2073_v22 }
 0x2a9   : > { %v773_v30 = vsel %vm772_vm5, %v771_v29, %v735_v0 }
 0x2aa   : > { %774 = vst [vmem:[%s380_s1] sm:$0xff] %v773_v30 }
 0x2ab   : > { %v797_v31 = vld [vmem:[#allocation8 + $0x78] sm:$0xff]  ;;  %v796_v37 = vld [vmem:[#allocation8 + $0x70] sm:$0xff]  ;;  %v795_v42 = vld [vmem:[#allocation8 + $0x68] sm:$0xff]  ;;  %vm1141_vm6 = vcmask 1040384   ;;  %vm1143_vm7 = vcmask 1042434   ;;  %vm1145_vm8 = vcmask 1041408  }
 0x2ac   : > { %v813_v34 = vld [vmem:[#allocation8 + $0xf8] sm:$0xff]  ;;  %910 = vmatpush.xpose.msra.mxu0 %v797_v31  ;;  %v812_v38 = vld [vmem:[#allocation8 + $0xf0] sm:$0xff]  ;;  %v811_v43 = vld [vmem:[#allocation8 + $0xe8] sm:$0xff]  ;;  %vm1147_vm9 = vcmask 1044484   ;;  %vm1149_vm10 = vcmask 1046534   ;;  %vm1151_vm11 = vcmask 1045508  }
 0x2ad   : > { %v829_v35 = vld [vmem:[#allocation8 + $0x178] sm:$0xff]  ;;  %930 = vmatpush.xpose.msra.mxu1 %v813_v34  ;;  %v828_v40 = vld [vmem:[#allocation8 + $0x170] sm:$0xff]  ;;  %v827_v44 = vld [vmem:[#allocation8 + $0x168] sm:$0xff]  ;;  %vm1153_vm12 = vcmask 1043456  }
 0x2ae   : > { %v845_v36 = vld [vmem:[#allocation8 + $0x1f8] sm:$0xff]  ;;  %950 = vmatpush.xpose.msra.mxu2 %v829_v35  ;;  %v844_v41 = vld [vmem:[#allocation8 + $0x1f0] sm:$0xff]  ;;  %v843_v33 = vld [vmem:[#allocation8 + $0x1e8] sm:$0xff] }
 0x2af   : > { %970 = vmatpush.xpose.msra.mxu3 %v845_v36  ;;  %v794_v46 = vld [vmem:[#allocation8 + $0x60] sm:$0xff]  ;;  %v793_v50 = vld [vmem:[#allocation8 + $0x58] sm:$0xff]  ;;  %v792_v55 = vld [vmem:[#allocation8 + $0x50] sm:$0xff] }
 0x2b0   : > { %911 = vmatpush.xpose.msra.mxu0 %v796_v37  ;;  %v810_v47 = vld [vmem:[#allocation8 + $0xe0] sm:$0xff]  ;;  %v809_v51 = vld [vmem:[#allocation8 + $0xd8] sm:$0xff]  ;;  %v808_v56 = vld [vmem:[#allocation8 + $0xd0] sm:$0xff] }
 0x2b1   : > { %931 = vmatpush.xpose.msra.mxu1 %v812_v38  ;;  %v826_v48 = vld [vmem:[#allocation8 + $0x160] sm:$0xff]  ;;  %v825_v52 = vld [vmem:[#allocation8 + $0x158] sm:$0xff]  ;;  %v824_v57 = vld [vmem:[#allocation8 + $0x150] sm:$0xff] }
 0x2b2   : > { %951 = vmatpush.xpose.msra.mxu2 %v828_v40  ;;  %v842_v49 = vld [vmem:[#allocation8 + $0x1e0] sm:$0xff]  ;;  %v841_v54 = vld [vmem:[#allocation8 + $0x1d8] sm:$0xff]  ;;  %v840_v58 = vld [vmem:[#allocation8 + $0x1d0] sm:$0xff] }
 0x2b3   : > { %971 = vmatpush.xpose.msra.mxu3 %v844_v41  ;;  %v791_v59 = vld [vmem:[#allocation8 + $0x48] sm:$0xff]  ;;  %v790_v63 = vld [vmem:[#allocation8 + $0x40] sm:$0xff]  ;;  %v789_v3 = vld [vmem:[#allocation8 + $0x38] sm:$0xff] }
 0x2b4   : > { %912 = vmatpush.xpose.msra.mxu0 %v795_v42  ;;  %v807_v60 = vld [vmem:[#allocation8 + $0xc8] sm:$0xff]  ;;  %v806_v0 = vld [vmem:[#allocation8 + $0xc0] sm:$0xff]  ;;  %v805_v4 = vld [vmem:[#allocation8 + $0xb8] sm:$0xff] }
 0x2b5   : > { %932 = vmatpush.xpose.msra.mxu1 %v811_v43  ;;  %v823_v61 = vld [vmem:[#allocation8 + $0x148] sm:$0xff]  ;;  %v822_v1 = vld [vmem:[#allocation8 + $0x140] sm:$0xff]  ;;  %v821_v5 = vld [vmem:[#allocation8 + $0x138] sm:$0xff] }
 0x2b6   : > { %952 = vmatpush.xpose.msra.mxu2 %v827_v44  ;;  %v839_v62 = vld [vmem:[#allocation8 + $0x1c8] sm:$0xff]  ;;  %v838_v2 = vld [vmem:[#allocation8 + $0x1c0] sm:$0xff]  ;;  %v837_v7 = vld [vmem:[#allocation8 + $0x1b8] sm:$0xff] }
 0x2b7   : > { %972 = vmatpush.xpose.msra.mxu3 %v843_v33  ;;  %v788_v8 = vld [vmem:[#allocation8 + $0x30] sm:$0xff]  ;;  %v787_v12 = vld [vmem:[#allocation8 + $0x28] sm:$0xff]  ;;  %v786_v18 = vld [vmem:[#allocation8 + $0x20] sm:$0xff] }
 0x2b8   : > { %913 = vmatpush.xpose.msra.mxu0 %v794_v46  ;;  %v804_v9 = vld [vmem:[#allocation8 + $0xb0] sm:$0xff]  ;;  %v803_v15 = vld [vmem:[#allocation8 + $0xa8] sm:$0xff]  ;;  %v802_v19 = vld [vmem:[#allocation8 + $0xa0] sm:$0xff] }
 0x2b9   : > { %933 = vmatpush.xpose.msra.mxu1 %v810_v47  ;;  %v820_v10 = vld [vmem:[#allocation8 + $0x130] sm:$0xff]  ;;  %v819_v16 = vld [vmem:[#allocation8 + $0x128] sm:$0xff]  ;;  %v818_v20 = vld [vmem:[#allocation8 + $0x120] sm:$0xff] }
 0x2ba   : > { %953 = vmatpush.xpose.msra.mxu2 %v826_v48  ;;  %v836_v11 = vld [vmem:[#allocation8 + $0x1b0] sm:$0xff]  ;;  %v835_v17 = vld [vmem:[#allocation8 + $0x1a8] sm:$0xff]  ;;  %v834_v23 = vld [vmem:[#allocation8 + $0x1a0] sm:$0xff] }
 0x2bb   : > { %973 = vmatpush.xpose.msra.mxu3 %v842_v49  ;;  %v785_v24 = vld [vmem:[#allocation8 + $0x18] sm:$0xff]  ;;  %v784_v31 = vld [vmem:[#allocation8 + $0x10] sm:$0xff]  ;;  %v783_v37 = vld [vmem:[#allocation8 + $0x8] sm:$0xff] }
 0x2bc   : > { %914 = vmatpush.xpose.msra.mxu0 %v793_v50  ;;  %v801_v25 = vld [vmem:[#allocation8 + $0x98] sm:$0xff]  ;;  %v800_v34 = vld [vmem:[#allocation8 + $0x90] sm:$0xff]  ;;  %v799_v38 = vld [vmem:[#allocation8 + $0x88] sm:$0xff] }
 0x2bd   : > { %934 = vmatpush.xpose.msra.mxu1 %v809_v51  ;;  %v817_v28 = vld [vmem:[#allocation8 + $0x118] sm:$0xff]  ;;  %v816_v35 = vld [vmem:[#allocation8 + $0x110] sm:$0xff]  ;;  %v815_v40 = vld [vmem:[#allocation8 + $0x108] sm:$0xff] }
 0x2be   : > { %954 = vmatpush.xpose.msra.mxu2 %v825_v52  ;;  %v833_v30 = vld [vmem:[#allocation8 + $0x198] sm:$0xff]  ;;  %v832_v36 = vld [vmem:[#allocation8 + $0x190] sm:$0xff]  ;;  %v831_v41 = vld [vmem:[#allocation8 + $0x188] sm:$0xff] }
 0x2bf   : > { %974 = vmatpush.xpose.msra.mxu3 %v841_v54  ;;  %v782_v42 = vld [vmem:[#allocation8] sm:$0xff]  ;;  %v861_v46 = vld [vmem:[#allocation8 + $0x278] sm:$0xff]  ;;  %v860_v50 = vld [vmem:[#allocation8 + $0x270] sm:$0xff] }
 0x2c0   : > { %915 = vmatpush.xpose.msra.mxu0 %v792_v55  ;;  %v798_v43 = vld [vmem:[#allocation8 + $0x80] sm:$0xff]  ;;  %v877_v47 = vld [vmem:[#allocation8 + $0x2f8] sm:$0xff]  ;;  %v876_v51 = vld [vmem:[#allocation8 + $0x2f0] sm:$0xff] }
 0x2c1   : > { %935 = vmatpush.xpose.msra.mxu1 %v808_v56  ;;  %v814_v44 = vld [vmem:[#allocation8 + $0x100] sm:$0xff]  ;;  %v893_v48 = vld [vmem:[#allocation8 + $0x378] sm:$0xff]  ;;  %v892_v52 = vld [vmem:[#allocation8 + $0x370] sm:$0xff] }
 0x2c2   : > { %955 = vmatpush.xpose.msra.mxu2 %v824_v57  ;;  %v830_v33 = vld [vmem:[#allocation8 + $0x180] sm:$0xff]  ;;  %v909_v49 = vld [vmem:[#allocation8 + $0x3f8] sm:$0xff]  ;;  %v908_v54 = vld [vmem:[#allocation8 + $0x3f0] sm:$0xff] }
 0x2c3   : > { %975 = vmatpush.xpose.msra.mxu3 %v840_v58  ;;  %v859_v55 = vld [vmem:[#allocation8 + $0x268] sm:$0xff]  ;;  %v888_v22 = vld [vmem:[#allocation8 + $0x350] sm:$0xff] }
 0x2c4   : > { %916 = vmatpush.xpose.msra.mxu0 %v791_v59  ;;  %v875_v56 = vld [vmem:[#allocation8 + $0x2e8] sm:$0xff]  ;;  %v858_v59 = vld [vmem:[#allocation8 + $0x260] sm:$0xff] }
 0x2c5   : > { %936 = vmatpush.xpose.msra.mxu1 %v807_v60  ;;  %v891_v57 = vld [vmem:[#allocation8 + $0x368] sm:$0xff]  ;;  %v874_v60 = vld [vmem:[#allocation8 + $0x2e0] sm:$0xff] }
 0x2c6   : > { %956 = vmatpush.xpose.msra.mxu2 %v823_v61  ;;  %v907_v58 = vld [vmem:[#allocation8 + $0x3e8] sm:$0xff]  ;;  %v890_v61 = vld [vmem:[#allocation8 + $0x360] sm:$0xff] }
 0x2c7   : > { %976 = vmatpush.xpose.msra.mxu3 %v839_v62  ;;  %v906_v62 = vld [vmem:[#allocation8 + $0x3e0] sm:$0xff] }
 0x2c8   : > { %917 = vmatpush.xpose.msra.mxu0 %v790_v63  ;;  %v779_v63 = vadd.f32 %v771_v29, %v2069_v27  ;;  %v904_v27 = vld [vmem:[#allocation8 + $0x3d0] sm:$0xff]  ;;  %v871_v29 = vld [vmem:[#allocation8 + $0x2c8] sm:$0xff] }
 0x2c9   : > { %937 = vmatpush.xpose.msra.mxu1 %v806_v0 }
 0x2ca   : > { %957 = vmatpush.xpose.msra.mxu2 %v822_v1  ;;  %v780_v0 = vmul.f32 %v779_v63, %v2066_v26  ;;  %v857_v1 = vld [vmem:[#allocation8 + $0x258] sm:$0xff]  ;;  %v855_v26 = vld [vmem:[#allocation8 + $0x248] sm:$0xff] }
 0x2cb   : > { %977 = vmatpush.xpose.msra.mxu3 %v838_v2  ;;  %v873_v2 = vld [vmem:[#allocation8 + $0x2d8] sm:$0xff] }
 0x2cc   : > { %918 = vmatpush.xpose.msra.mxu0 %v789_v3  ;;  %v889_v3 = vld [vmem:[#allocation8 + $0x358] sm:$0xff] }
 0x2cd   : > { %938 = vmatpush.xpose.msra.mxu1 %v805_v4  ;;  %v905_v4 = vld [vmem:[#allocation8 + $0x3d8] sm:$0xff] }
 0x2ce   : > { %958 = vmatpush.xpose.msra.mxu2 %v821_v5  ;;  %v2087_v5 = vmul.f32 -0.375, %v780_v0 }
 0x2cf   : > { %978 = vmatpush.xpose.msra.mxu3 %v837_v7  ;;  %v856_v7 = vld [vmem:[#allocation8 + $0x250] sm:$0xff] }
 0x2d0   : > { %919 = vmatpush.xpose.msra.mxu0 %v788_v8  ;;  %v872_v8 = vld [vmem:[#allocation8 + $0x2d0] sm:$0xff] }
 0x2d1   : > { %939 = vmatpush.xpose.msra.mxu1 %v804_v9  ;;  %v887_v9 = vld [vmem:[#allocation8 + $0x348] sm:$0xff] }
 0x2d2   : > { %959 = vmatpush.xpose.msra.mxu2 %v820_v10  ;;  %v903_v10 = vld [vmem:[#allocation8 + $0x3c8] sm:$0xff] }
 0x2d3   : > { %979 = vmatpush.xpose.msra.mxu3 %v836_v11  ;;  %v854_v11 = vld [vmem:[#allocation8 + $0x240] sm:$0xff] }
 0x2d4   : > { %920 = vmatpush.xpose.msra.mxu0 %v787_v12  ;;  %v870_v12 = vld [vmem:[#allocation8 + $0x2c0] sm:$0xff] }
 0x2d5   : > { %940 = vmatpush.xpose.msra.mxu1 %v803_v15  ;;  %v886_v15 = vld [vmem:[#allocation8 + $0x340] sm:$0xff] }
 0x2d6   : > { %960 = vmatpush.xpose.msra.mxu2 %v819_v16  ;;  %v902_v16 = vld [vmem:[#allocation8 + $0x3c0] sm:$0xff] }
 0x2d7   : > { %980 = vmatpush.xpose.msra.mxu3 %v835_v17  ;;  %v853_v17 = vld [vmem:[#allocation8 + $0x238] sm:$0xff] }
 0x2d8   : > { %921 = vmatpush.xpose.msra.mxu0 %v786_v18  ;;  %v869_v18 = vld [vmem:[#allocation8 + $0x2b8] sm:$0xff] }
 0x2d9   : > { %941 = vmatpush.xpose.msra.mxu1 %v802_v19  ;;  %v885_v19 = vld [vmem:[#allocation8 + $0x338] sm:$0xff] }
 0x2da   : > { %961 = vmatpush.xpose.msra.mxu2 %v818_v20  ;;  %v901_v20 = vld [vmem:[#allocation8 + $0x3b8] sm:$0xff] }
 0x2db   : > { %981 = vmatpush.xpose.msra.mxu3 %v834_v23  ;;  %v852_v23 = vld [vmem:[#allocation8 + $0x230] sm:$0xff] }
 0x2dc   : > { %922 = vmatpush.xpose.msra.mxu0 %v785_v24  ;;  %v868_v24 = vld [vmem:[#allocation8 + $0x2b0] sm:$0xff] }
 0x2dd   : > { %942 = vmatpush.xpose.msra.mxu1 %v801_v25  ;;  %v884_v25 = vld [vmem:[#allocation8 + $0x330] sm:$0xff] }
 0x2de   : > { %962 = vmatpush.xpose.msra.mxu2 %v817_v28  ;;  %v900_v28 = vld [vmem:[#allocation8 + $0x3b0] sm:$0xff] }
 0x2df   : > { %982 = vmatpush.xpose.msra.mxu3 %v833_v30  ;;  %v851_v30 = vld [vmem:[#allocation8 + $0x228] sm:$0xff] }
 0x2e0   : > { %923 = vmatpush.xpose.msra.mxu0 %v784_v31  ;;  %v867_v31 = vld [vmem:[#allocation8 + $0x2a8] sm:$0xff] }
 0x2e1   : > { %943 = vmatpush.xpose.msra.mxu1 %v800_v34  ;;  %v883_v34 = vld [vmem:[#allocation8 + $0x328] sm:$0xff] }
 0x2e2   : > { %963 = vmatpush.xpose.msra.mxu2 %v816_v35  ;;  %v899_v35 = vld [vmem:[#allocation8 + $0x3a8] sm:$0xff] }
 0x2e3   : > { %983 = vmatpush.xpose.msra.mxu3 %v832_v36  ;;  %v850_v36 = vld [vmem:[#allocation8 + $0x220] sm:$0xff] }
 0x2e4   : > { %924 = vmatpush.xpose.msra.mxu0 %v783_v37  ;;  %v866_v37 = vld [vmem:[#allocation8 + $0x2a0] sm:$0xff] }
 0x2e5   : > { %944 = vmatpush.xpose.msra.mxu1 %v799_v38  ;;  %v882_v38 = vld [vmem:[#allocation8 + $0x320] sm:$0xff] }
 0x2e6   : > { %964 = vmatpush.xpose.msra.mxu2 %v815_v40  ;;  %v898_v40 = vld [vmem:[#allocation8 + $0x3a0] sm:$0xff] }
 0x2e7   : > { %984 = vmatpush.xpose.msra.mxu3 %v831_v41  ;;  %v849_v41 = vld [vmem:[#allocation8 + $0x218] sm:$0xff] }
 0x2e8   : > { %925 = vmatpush.xpose.msra.mxu0 %v782_v42  ;;  %v865_v42 = vld [vmem:[#allocation8 + $0x298] sm:$0xff] }
 0x2e9   : > { %945 = vmatpush.xpose.msra.mxu1 %v798_v43  ;;  %v881_v43 = vld [vmem:[#allocation8 + $0x318] sm:$0xff] }
 0x2ea   : > { %965 = vmatpush.xpose.msra.mxu2 %v814_v44  ;;  %v897_v44 = vld [vmem:[#allocation8 + $0x398] sm:$0xff] }
 0x2eb   : > { %985 = vmatpush.xpose.msra.mxu3 %v830_v33  ;;  %926 = vmatmul.f32.vlgmr.msra.gmra.mxu0 %v2087_v5  ;;  %v848_v33 = vld [vmem:[#allocation8 + $0x210] sm:$0xff] }
 0x2ec   : > { %990 = vmatpush.xpose.msrb.mxu0 %v861_v46  ;;  %946 = vmatmul.f32.vlgmr.msra.gmra.mxu1 %v2087_v5  ;;  %v864_v46 = vld [vmem:[#allocation8 + $0x290] sm:$0xff] }
 0x2ed   : > { %1010 = vmatpush.xpose.msrb.mxu1 %v877_v47  ;;  %966 = vmatmul.f32.vlgmr.msra.gmra.mxu2 %v2087_v5  ;;  %v880_v47 = vld [vmem:[#allocation8 + $0x310] sm:$0xff] }
 0x2ee   : > { %1030 = vmatpush.xpose.msrb.mxu2 %v893_v48  ;;  %986 = vmatmul.f32.vlgmr.msra.gmra.mxu3 %v2087_v5  ;;  %v896_v48 = vld [vmem:[#allocation8 + $0x390] sm:$0xff] }
 0x2ef   : > { %1050 = vmatpush.xpose.msrb.mxu3 %v909_v49  ;;  %v847_v49 = vld [vmem:[#allocation8 + $0x208] sm:$0xff] }
 0x2f0   : > { %991 = vmatpush.xpose.msrb.mxu0 %v860_v50  ;;  %v863_v50 = vld [vmem:[#allocation8 + $0x288] sm:$0xff] }
 0x2f1   : > { %1011 = vmatpush.xpose.msrb.mxu1 %v876_v51  ;;  %v879_v51 = vld [vmem:[#allocation8 + $0x308] sm:$0xff] }
 0x2f2   : > { %1031 = vmatpush.xpose.msrb.mxu2 %v892_v52  ;;  %v895_v52 = vld [vmem:[#allocation8 + $0x388] sm:$0xff] }
 0x2f3   : > { %1051 = vmatpush.xpose.msrb.mxu3 %v908_v54  ;;  %v846_v54 = vld [vmem:[#allocation8 + $0x200] sm:$0xff] }
 0x2f4   : > { %992 = vmatpush.xpose.msrb.mxu0 %v859_v55  ;;  %v862_v55 = vld [vmem:[#allocation8 + $0x280] sm:$0xff] }
 0x2f5   : > { %1012 = vmatpush.xpose.msrb.mxu1 %v875_v56  ;;  %v878_v56 = vld [vmem:[#allocation8 + $0x300] sm:$0xff] }
 0x2f6   : > { %1032 = vmatpush.xpose.msrb.mxu2 %v891_v57  ;;  %v894_v57 = vld [vmem:[#allocation8 + $0x380] sm:$0xff] }
 0x2f7   : > { %1052 = vmatpush.xpose.msrb.mxu3 %v907_v58 }
 0x2f8   : > { %993 = vmatpush.xpose.msrb.mxu0 %v858_v59 }
 0x2f9   : > { %1013 = vmatpush.xpose.msrb.mxu1 %v874_v60 }
 0x2fa   : > { %1033 = vmatpush.xpose.msrb.mxu2 %v890_v61 }
 0x2fb   : > { %1053 = vmatpush.xpose.msrb.mxu3 %v906_v62 }
 0x2fc   : > { %994 = vmatpush.xpose.msrb.mxu0 %v857_v1 }
 0x2fd   : > { %1014 = vmatpush.xpose.msrb.mxu1 %v873_v2 }
 0x2fe   : > { %1034 = vmatpush.xpose.msrb.mxu2 %v889_v3 }
 0x2ff   : > { %1054 = vmatpush.xpose.msrb.mxu3 %v905_v4 }
 0x300   : > { %995 = vmatpush.xpose.msrb.mxu0 %v856_v7 }
 0x301   : > { %1015 = vmatpush.xpose.msrb.mxu1 %v872_v8 }
 0x302   : > { %1035 = vmatpush.xpose.msrb.mxu2 %v888_v22 }
 0x303   : > { %1055 = vmatpush.xpose.msrb.mxu3 %v904_v27 }
 0x304   : > { %996 = vmatpush.xpose.msrb.mxu0 %v855_v26 }
 0x305   : > { %1016 = vmatpush.xpose.msrb.mxu1 %v871_v29 }
 0x306   : > { %1036 = vmatpush.xpose.msrb.mxu2 %v887_v9 }
 0x307   : > { %1056 = vmatpush.xpose.msrb.mxu3 %v903_v10 }
 0x308   : > { %997 = vmatpush.xpose.msrb.mxu0 %v854_v11 }
 0x309   : > { %1017 = vmatpush.xpose.msrb.mxu1 %v870_v12 }
 0x30a   : > { %1037 = vmatpush.xpose.msrb.mxu2 %v886_v15 }
 0x30b   : > { %1057 = vmatpush.xpose.msrb.mxu3 %v902_v16 }
 0x30c   : > { %998 = vmatpush.xpose.msrb.mxu0 %v853_v17 }
 0x30d   : > { %1018 = vmatpush.xpose.msrb.mxu1 %v869_v18 }
 0x30e   : > { %1038 = vmatpush.xpose.msrb.mxu2 %v885_v19 }
 0x30f   : > { %1058 = vmatpush.xpose.msrb.mxu3 %v901_v20 }
 0x310   : > { %999 = vmatpush.xpose.msrb.mxu0 %v852_v23 }
 0x311   : > { %1019 = vmatpush.xpose.msrb.mxu1 %v868_v24 }
 0x312   : > { %1039 = vmatpush.xpose.msrb.mxu2 %v884_v25 }
 0x313   : > { %1059 = vmatpush.xpose.msrb.mxu3 %v900_v28 }
 0x314   : > { %1000 = vmatpush.xpose.msrb.mxu0 %v851_v30 }
 0x315   : > { %1020 = vmatpush.xpose.msrb.mxu1 %v867_v31 }
 0x316   : > { %1040 = vmatpush.xpose.msrb.mxu2 %v883_v34 }
 0x317   : > { %1060 = vmatpush.xpose.msrb.mxu3 %v899_v35 }
 0x318   : > { %1001 = vmatpush.xpose.msrb.mxu0 %v850_v36 }
 0x319   : > { %1021 = vmatpush.xpose.msrb.mxu1 %v866_v37 }
 0x31a   : > { %1041 = vmatpush.xpose.msrb.mxu2 %v882_v38 }
 0x31b   : > { %1061 = vmatpush.xpose.msrb.mxu3 %v898_v40 }
 0x31c   : > { %1002 = vmatpush.xpose.msrb.mxu0 %v849_v41 }
 0x31d   : > { %1022 = vmatpush.xpose.msrb.mxu1 %v865_v42 }
 0x31e   : > { %1042 = vmatpush.xpose.msrb.mxu2 %v881_v43 }
 0x31f   : > { %1062 = vmatpush.xpose.msrb.mxu3 %v897_v44 }
 0x320   : > { %1003 = vmatpush.xpose.msrb.mxu0 %v848_v33 }
 0x321   : > { %1023 = vmatpush.xpose.msrb.mxu1 %v864_v46 }
 0x322   : > { %1043 = vmatpush.xpose.msrb.mxu2 %v880_v47 }
 0x323   : > { %1063 = vmatpush.xpose.msrb.mxu3 %v896_v48 }
 0x324   : > { %1004 = vmatpush.xpose.msrb.mxu0 %v847_v49 }
 0x325   : > { %1024 = vmatpush.xpose.msrb.mxu1 %v863_v50 }
 0x326   : > { %1044 = vmatpush.xpose.msrb.mxu2 %v879_v51 }
 0x327   : > { %1064 = vmatpush.xpose.msrb.mxu3 %v895_v52 }
 0x328   : > { %1005 = vmatpush.xpose.msrb.mxu0 %v846_v54 }
 0x329   : > { %1025 = vmatpush.xpose.msrb.mxu1 %v862_v55 }
 0x32a   : > { %1045 = vmatpush.xpose.msrb.mxu2 %v878_v56 }
 0x32b   : > { %1065 = vmatpush.xpose.msrb.mxu3 %v894_v57  ;;  %1006 = vmatmul.f32.vlgmr.msrb.gmra.mxu0 %v2087_v5 }
 0x32c   : > { %1026 = vmatmul.f32.vlgmr.msrb.gmra.mxu1 %v2087_v5 }
 0x32d   : > { %1046 = vmatmul.f32.vlgmr.msrb.gmra.mxu2 %v2087_v5 }
 0x32e   : > { %1066 = vmatmul.f32.vlgmr.msrb.gmra.mxu3 %v2087_v5 }
 0x368   : > { %v927_v61 = vpop.f32.mrf.mxu0 }
 0x369   : > { %v947_v58 = vpop.f32.mrf.mxu1  ;;  %v1070_v0 = vmul.f32 %v927_v61, %v2019_v39  ;;  %v1157_v1 = vrot.slane %v927_v61, 4 }
 0x36a   : > { %v1071_v59 = vmul.f32 %v947_v58, %v2031_v53  ;;  %v1163_v60 = vrot.slane %v947_v58, 4 }
 0x36b   : > { %v1078_v8 = vrot.slane %v1070_v0, 4  ;;  %v1158_v22 = vadd.f32 %v1157_v1, %v927_v61 }
 0x36c   : > { %v1084_v62 = vrot.slane %v1071_v59, 4  ;;  %v1164_v63 = vadd.f32 %v1163_v60, %v947_v58 }
 0x36d   : > { %v1079_v10 = vadd.f32 %v1078_v8, %v1070_v0  ;;  %v1159_v11 = vrot.slane %v1158_v22, 2 }
 0x36e   : > { %v1085_v4 = vadd.f32 %v1084_v62, %v1071_v59  ;;  %v1165_v7 = vrot.slane %v1164_v63, 2 }
 0x36f   : > { %v1080_v19 = vrot.slane %v1079_v10, 2  ;;  %v1160_v20 = vadd.f32 %v1159_v11, %v1158_v22 }
 0x370   : > { %v967_v2 = vpop.f32.mrf.mxu2  ;;  %v1086_v53 = vrot.slane %v1085_v4, 2  ;;  %v1166_v9 = vadd.f32 %v1165_v7, %v1164_v63 }
 0x371   : > { %v987_v3 = vpop.f32.mrf.mxu3  ;;  %v1072_v27 = vmul.f32 %v967_v2, %v2011_v32  ;;  %v1169_v26 = vrot.slane %v967_v2, 4  ;;  %v1161_v31 = vrot.slane %v1160_v20, 1 }
 0x372   : > { %v1073_v5 = vmul.f32 %v987_v3, %v2025_v45  ;;  %v1175_v29 = vrot.slane %v987_v3, 4  ;;  %v1087_v17 = vadd.f32 %v1086_v53, %v1085_v4  ;;  %v1167_v18 = vrot.slane %v1166_v9, 1 }
 0x373   : > { %v1090_v12 = vrot.slane %v1072_v27, 4  ;;  %v1170_v15 = vadd.f32 %v1169_v26, %v967_v2  ;;  %v1081_v45 = vadd.f32 %v1080_v19, %v1079_v10  ;;  %v1162_v42 = vadd.f32 %v1161_v31, %v1160_v20 }
 0x374   : > { %v1096_v39 = vrot.slane %v1073_v5, 4  ;;  %v1176_v16 = vadd.f32 %v1175_v29, %v987_v3  ;;  %v1088_v28 = vrot.slane %v1087_v17, 1  ;;  %v1168_v30 = vadd.f32 %v1167_v18, %v1166_v9 }
 0x375   : > { %v1091_v23 = vadd.f32 %v1090_v12, %v1072_v27  ;;  %v1171_v24 = vrot.slane %v1170_v15, 2  ;;  %v1082_v41 = vrot.slane %v1081_v45, 1 }
 0x376   : > { %v1097_v25 = vadd.f32 %v1096_v39, %v1073_v5  ;;  %v1177_v32 = vrot.slane %v1176_v16, 2  ;;  %v2101_v38 = vadd.f32 %v1088_v28, %v1087_v17  ;;  %v1213_v40 = vrot.slane %v1168_v30, 7 }
 0x377   : > { %v1092_v34 = vrot.slane %v1091_v23, 2  ;;  %v1172_v35 = vadd.f32 %v1171_v24, %v1170_v15  ;;  %v2106_v59 = vadd.f32 %v1082_v41, %v1081_v45 }
 0x378   : > { %v1098_v36 = vrot.slane %v1097_v25, 2  ;;  %v1178_v37 = vadd.f32 %v1177_v32, %v1176_v16  ;;  %v1134_v58 = vrot.slane %v2101_v38, 7  ;;  %v2109_v60 = vsel %vm1141_vm6, %v1162_v42, %v1213_v40 }
 0x379   : > { %v1093_v49 = vadd.f32 %v1092_v34, %v1091_v23  ;;  %v1173_v50 = vrot.slane %v1172_v35, 1 }
 0x37a   : > { %v1099_v51 = vadd.f32 %v1098_v36, %v1097_v25  ;;  %v1179_v52 = vrot.slane %v1178_v37, 1 }
 0x37b   : > { %v1094_v63 = vrot.slane %v1093_v49, 1  ;;  %v1174_v0 = vadd.f32 %v1173_v50, %v1172_v35 }
 0x37c   : > { %v1100_v1 = vrot.slane %v1099_v51, 1  ;;  %v1180_v2 = vadd.f32 %v1179_v52, %v1178_v37 }
 0x37d   : > { %v1095_v18 = vadd.f32 %v1094_v63, %v1093_v49  ;;  %v1214_v28 = vrot.slane %v1174_v0, 6  ;;  %v1142_v63 = vsel %vm1141_vm6, %v2106_v59, %v1134_v58 }
 0x37e   : > { %v1101_v19 = vadd.f32 %v1100_v1, %v1099_v51 }
 0x37f   : > { %v1135_v37 = vrot.slane %v1095_v18, 6 }
 0x380   : > { %v1136_v40 = vrot.slane %v1101_v19, 5 }
 0x3a8   : > { %v1007_v43 = vpop.f32.mrf.mxu0 }
 0x3a9   : > { %v1027_v44 = vpop.f32.mrf.mxu1  ;;  %v1074_v33 = vmul.f32 %v1007_v43, %v2044_v13  ;;  %v1181_v46 = vrot.slane %v1007_v43, 4 }
 0x3aa   : > { %v1075_v47 = vmul.f32 %v1027_v44, %v2053_v21  ;;  %v1187_v48 = vrot.slane %v1027_v44, 4 }
 0x3ab   : > { %v1102_v54 = vrot.slane %v1074_v33, 4  ;;  %v1182_v55 = vadd.f32 %v1181_v46, %v1007_v43 }
 0x3ac   : > { %v1108_v56 = vrot.slane %v1075_v47, 4  ;;  %v1188_v57 = vadd.f32 %v1187_v48, %v1027_v44 }
 0x3ad   : > { %v1103_v13 = vadd.f32 %v1102_v54, %v1074_v33  ;;  %v1183_v61 = vrot.slane %v1182_v55, 2 }
 0x3ae   : > { %v1109_v62 = vadd.f32 %v1108_v56, %v1075_v47  ;;  %v1189_v21 = vrot.slane %v1188_v57, 2 }
 0x3af   : > { %v1104_v3 = vrot.slane %v1103_v13, 2  ;;  %v1184_v4 = vadd.f32 %v1183_v61, %v1182_v55 }
 0x3b0   : > { %v1110_v7 = vrot.slane %v1109_v62, 2  ;;  %v1190_v8 = vadd.f32 %v1189_v21, %v1188_v57  ;;  %v1047_v22 = vpop.f32.mrf.mxu2  ;;  %v1144_v21 = vsel %vm1143_vm7, %v1135_v37, %v1136_v40 }
 0x3b1   : > { %v1067_v27 = vpop.f32.mrf.mxu3  ;;  %v1076_v26 = vmul.f32 %v1047_v22, %v2039_v6  ;;  %v1193_v5 = vrot.slane %v1047_v22, 4  ;;  %v1105_v9 = vadd.f32 %v1104_v3, %v1103_v13  ;;  %v1185_v10 = vrot.slane %v1184_v4, 1 }
 0x3b2   : > { %v1077_v29 = vmul.f32 %v1067_v27, %v2047_v14  ;;  %v1199_v53 = vrot.slane %v1067_v27, 4  ;;  %v1111_v11 = vadd.f32 %v1110_v7, %v1109_v62  ;;  %v1191_v12 = vrot.slane %v1190_v8, 1 }
 0x3b3   : > { %v1114_v15 = vrot.slane %v1076_v26, 4  ;;  %v1194_v39 = vadd.f32 %v1193_v5, %v1047_v22  ;;  %v1106_v20 = vrot.slane %v1105_v9, 1  ;;  %v1215_v14 = vrot.slane %v1180_v2, 5 }
 0x3b4   : > { %v1120_v16 = vrot.slane %v1077_v29, 4  ;;  %v1200_v17 = vadd.f32 %v1199_v53, %v1067_v27  ;;  %v1112_v23 = vrot.slane %v1111_v11, 1  ;;  %v1186_v30 = vadd.f32 %v1185_v10, %v1184_v4 }
 0x3b5   : > { %v1115_v24 = vadd.f32 %v1114_v15, %v1076_v26  ;;  %v1195_v25 = vrot.slane %v1194_v39, 2  ;;  %v1192_v45 = vadd.f32 %v1191_v12, %v1190_v8  ;;  %v1107_v41 = vadd.f32 %v1106_v20, %v1105_v9 }
 0x3b6   : > { %v1121_v6 = vadd.f32 %v1120_v16, %v1077_v29  ;;  %v1201_v32 = vrot.slane %v1200_v17, 2  ;;  %v1113_v42 = vadd.f32 %v1112_v23, %v1111_v11  ;;  %v1221_v47 = vsel %vm1143_vm7, %v1214_v28, %v1215_v14 }
 0x3b7   : > { %v1116_v31 = vrot.slane %v1115_v24, 2  ;;  %v1196_v34 = vadd.f32 %v1195_v25, %v1194_v39  ;;  %v1216_v48 = vrot.slane %v1186_v30, 4  ;;  %v1217_v49 = vrot.slane %v1192_v45, 3 }
 0x3b8   : > { %v1122_v35 = vrot.slane %v1121_v6, 2  ;;  %v1202_v36 = vadd.f32 %v1201_v32, %v1200_v17  ;;  %v1137_v55 = vrot.slane %v1107_v41, 4  ;;  %v1138_v56 = vrot.slane %v1113_v42, 3 }
 0x3b9   : > { %v1117_v43 = vadd.f32 %v1116_v31, %v1115_v24  ;;  %v1197_v44 = vrot.slane %v1196_v34, 1  ;;  %v1223_v0 = vsel %vm1147_vm9, %v1216_v48, %v1217_v49  ;;  %v1222_v4 = vsel %vm1145_vm8, %v2109_v60, %v1221_v47 }
 0x3ba   : > { %v1123_v33 = vadd.f32 %v1122_v35, %v1121_v6  ;;  %v1203_v46 = vrot.slane %v1202_v36, 1  ;;  %v1148_v8 = vsel %vm1147_vm9, %v1137_v55, %v1138_v56  ;;  %v1146_v27 = vsel %vm1145_vm8, %v1142_v63, %v1144_v21 }
 0x3bb   : > { %v1118_v50 = vrot.slane %v1117_v43, 1  ;;  %v1198_v51 = vadd.f32 %v1197_v44, %v1196_v34 }
 0x3bc   : > { %v1124_v52 = vrot.slane %v1123_v33, 1  ;;  %v1204_v54 = vadd.f32 %v1203_v46, %v1202_v36 }
 0x3bd   : > { %v1119_v57 = vadd.f32 %v1118_v50, %v1117_v43  ;;  %v1218_v13 = vrot.slane %v1198_v51, 2 }
 0x3be   : > { %v1125_v61 = vadd.f32 %v1124_v52, %v1123_v33  ;;  %v1219_v62 = vrot.slane %v1204_v54, 1 }
 0x3bf   : > { %v1139_v1 = vrot.slane %v1119_v57, 2 }
 0x3c0   : > { %v1140_v2 = vrot.slane %v1125_v61, 1  ;;  %v1224_v3 = vsel %vm1149_vm10, %v1218_v13, %v1219_v62 }
 0x3c1   : > { %v1225_v7 = vsel %vm1151_vm11, %v1223_v0, %v1224_v3 }
 0x3c2   : > { %v1150_v22 = vsel %vm1149_vm10, %v1139_v1, %v1140_v2  ;;  %v1226_v38 = vsel %vm1153_vm12, %v1222_v4, %v1225_v7 }
 0x3c3   : > { %v1152_v58 = vsel %vm1151_vm11, %v1148_v8, %v1150_v22  ;;  %1228 = vst [vmem:[#allocation13] sm:$0xff] %v1226_v38 }
 0x3c4   : > { %v1154_v59 = vsel %vm1153_vm12, %v1146_v27, %v1152_v58 }
 0x3c5   : > { %1156 = vst [vmem:[#allocation11] sm:$0xff] %v1154_v59 }
 0x3c6 PF: > { %s1791_s23 = smov [#allocation11]   ;;  %s1256_s26 = sshll.u32 %s2182_s6, 4  ;;  %s1257_s26 = int_to_ptr.hbm [resolvable:$true] %s1256_s26 }
 0x3c7   : > { %s1254_s18 = sshll.u32 %s1791_s23, 4  ;;  %p2209_p13 = scmp.eq.s32.totalorder %s1854_s28, 2  ;;  %s1255_s18 = int_to_ptr.vmem [resolvable:$true] %s1254_s18 }
 0x3c8   : > { %s1434_s24 = sshll.u32 %s1854_s28, 3  ;;  %s1242_s3 = sshll.u32 %s380_s1, 4  ;;  %s1243_s3 = int_to_ptr.vmem [resolvable:$true] %s1242_s3 }
 0x3c9   : > { %1454 = dma.vmem_to_hbm [thread:$0]  (%p2209_p13), %s1255_s18, 128, %s1257_s26, [#allocation12]  }
 0x3ca   : > { %s1240_s21 = scalar_lea.hbm %s2181_s5, %s1434_s24  ;;  %s1230_s9 = scalar_lea.sflag [#allocation4], %s1981_s13 }
 0x3cb   : > { %s1244_s16 = sshll.u32 %s1240_s21, 4  ;;  %s1700_s22 = scalar_lea.hbm %s2181_s5, 24  ;;  %s1245_s16 = int_to_ptr.hbm [resolvable:$true] %s1244_s16 }
 0x3cc   : > { %s1694_s19 = sshra.s32 %s1245_s16, 4  ;;  %s1695_s19 = int_to_ptr.hbm [resolvable:$true] %s1694_s19 }
 0x3cd   : > { %s1696_s10 = scalar_lea.hbm %s1695_s19, 8  ;;  %p1701_p3 = scmp.lt.s32.totalorder %s1695_s19, %s2181_s5 }
 0x3ce   : > { %p1697_p12 = scmp.ne.s32.totalorder %s1695_s19, %s1696_s10  ;;  %p1702_p4 = scmp.lt.s32.totalorder %s1700_s22, %s1696_s10 }
 0x3d0   : > { %p1698_p1 = pnand %p1697_p12, %p1874_p6  ;;  %p1703_p8 = por %p1702_p4, %p1701_p3 }
 0x3d2   : > { %p1699_p2 = pneg %p1698_p1 }
 0x3d4   : > { %p1704_p9 = pnand %p1703_p8, %p1699_p2 }
 0x3d6   : > { %1707 = shalt.err (!%p1704_p9)
}
 0x3d7   : > { %1452 = dma.vmem_to_hbm [thread:$0]  (%p1874_p6), %s1243_s3, 128, %s1245_s16, %s1230_s9  }
 0x3d8   : > { %s1792_s13 = smov [#allocation13]   ;;  %s1268_s18 = sshll.u32 %s2183_s7, 4  ;;  %s1269_s18 = int_to_ptr.hbm [resolvable:$true] %s1268_s18 }
 0x3d9   : > { %s1266_s14 = sshll.u32 %s1792_s13, 4  ;;  %p2210_p0 = pmov %p2209_p13  ;;  %s1267_s14 = int_to_ptr.vmem [resolvable:$true] %s1266_s14 }
 0x3db   : > { %1456 = dma.vmem_to_hbm [thread:$0]  (%p2210_p0), %s1267_s14, 128, %s1269_s18, [#allocation12]  }
 0x3dc   : > { %p2211_p5 = pmov %p2210_p0 }
 0x3dd   : > { %p2212_p7 = pmov %p2210_p0 }
 0x3de   : > { %1765 = dma.done.wait (%p2211_p5), [#allocation12], 256  }
 0x3df   : > { %1767 = vsyncadd (%p2212_p7), [#allocation12], 4294967040 }
 0x3e0 PF: > { %s2213_s11 = sld [smem:[#allocation21_spill]] }
 0x3e1   : > { %s2214_s29 = sld [smem:[#allocation19_spill]] }
 0x3e6   : > { %p1487_p6 = scmp.ge.s32.totalorder %s2213_s11, 2 }
 0x3e7   : > { %s1290_s26 = sand.u32 1, %s2214_s29  }
 0x3e8   : > { %p1477_p11 = pnand %p1487_p6, %p1883_p10  ;;  %s1291_s24 = scalar_lea.sflag [#allocation4], %s1290_s26 }
 0x3ea   : > { %p1478_p13 = pneg %p1477_p11 }
 0x3ec   : > { %1769 = dma.done.wait (%p1478_p13), %s1291_s24, 128  }
 0x3ed   : > { %1771 = vsyncadd (%p1478_p13), %s1291_s24, 4294967168  ;;  %s2216_s27 = sld [smem:[#allocation22_spill]]  ;;  %s2219_s24 = smov %s1778_s25 }
 0x3ee   : > { %s2217_s12 = sld [smem:[#allocation20_spill]] }
 0x3ef   : > { %s2218_s26 = sld [smem:[#allocation23_spill]] }
 0x3f3   : > { %p26_p12 = scmp.ge.s32.totalorder %s2216_s27, 5  }
 0x3f4   : > { %s2220_s25 = smov %s2217_s12 }
 0x3f5   :  { %28 = sbr.rel (!%p26_p12) target bundleno = 12 (0xc), region = 133 }
 0x3fa   :  { %1297 = vsyncpa [#allocation3], 1 }
 0x3fb   :  { %1299 = vsyncpa [#allocation3 + $0x1], 1 }
 0x3fc   :  { %1300 = vsyncpa [#allocation6], 1 }
 0x3fd   :  { %1302 = vsyncpa [#allocation6 + $0x1], 1 }
 0x3fe   :  { %1303 = vsyncpa [#allocation9], 1 }
 0x3ff   :  { %1304 = vsyncpa [#allocation4], 1 }
 0x400   :  { %1306 = vsyncpa [#allocation4 + $0x1], 1 }
 0x401   :  { %1307 = vsyncpa [#allocation12], 1 }

</bundles_post_ra>
